<compile_context>
chip_gen: v7x
topology: tpu7x:2x2x1
jax: 0.10.0
libtpu: 0.0.40
codegen_flags: <defaults>
</compile_context>

<pallas_src>
import functools

import jax
import jax.numpy as jnp
from jax.experimental import pallas as pl
from jax.experimental.pallas import tpu as pltpu

CP = 128                        # lane-dense padded channel width
VMEM_LIMIT = 32 * 1024 * 1024   # safe scoped-VMEM limit on v5e/v6e/v7x (we use ~6 MiB)


# ----------------------------------------------------------------------------
# Fused kernel: conv1 GEMM -> conv2 im2col GEMM -> avg-pool -> classifier MLP
# ----------------------------------------------------------------------------
def _fused_meta_kernel(p1_ref, w1_ref, b1_ref, w2_ref, b2_ref,
                       fc1w_ref, fc1b_ref, fc2w_ref, fc2b_ref, o_ref,
                       *, h1, w1s, ho, wo):
    tb = p1_ref.shape[2]          # batch tile (multiple of 8)
    kp1 = p1_ref.shape[3]         # padded conv1 im2col K (64)
    cp = w1_ref.shape[1]          # 128

    # ---- conv1: one GEMM over all (h, w, b) rows of this batch tile ---------
    a1 = p1_ref[...].reshape(h1 * w1s * tb, kp1)                   # bf16
    y1 = jnp.dot(a1, w1_ref[...], preferred_element_type=jnp.float32)
    y1 = jnp.maximum(y1 + b1_ref[...], 0.0)                        # (h1*w1s*tb, cp) f32

    # ---- zero-pad the conv1 activation spatially (conv2 padding=1) ----------
    # Spatial dims live in the *leading* (untiled) positions, so padding is a
    # cheap concat of zero tile-groups and needs no scratch / masked stores.
    y1v = y1.reshape(h1, w1s, tb, cp)
    zr = jnp.zeros((1, w1s, tb, cp), jnp.float32)
    y1v = jnp.concatenate([zr, y1v, zr], axis=0)                   # (h1+2, w1s, tb, cp)
    zc = jnp.zeros((h1 + 2, 1, tb, cp), jnp.float32)
    y1v = jnp.concatenate([zc, y1v, zc], axis=1)                   # (h1+2, w1s+2, tb, cp)

    # Parity-split the padded spatial dims so every stride-2 tap of the
    # k=3 / s=2 conv is a *contiguous* slice (index 2q+r -> [q, r]).
    y1q = y1v.reshape((h1 + 2) // 2, 2, (w1s + 2) // 2, 2, tb, cp)

    # ---- conv2 im2col: 9 contiguous shifted views + one lane-dim concat -----
    parts = []
    for dh in range(3):
        for dw in range(3):
            parts.append(y1q[dh // 2: dh // 2 + ho, dh % 2,
                             dw // 2: dw // 2 + wo, dw % 2, :, :])  # (ho, wo, tb, cp)
    patch = jnp.concatenate(parts, axis=-1)                        # (ho, wo, tb, 9*cp)
    patch = patch.reshape(ho * wo * tb, 9 * cp).astype(jnp.bfloat16)

    # ---- conv2 GEMM (+bias+ReLU) fused with AdaptiveAvgPool2d(1) ------------
    y2 = jnp.dot(patch, w2_ref[...], preferred_element_type=jnp.float32)
    y2 = jnp.maximum(y2 + b2_ref[...], 0.0)                        # (ho*wo*tb, cp) f32
    pooled = jnp.sum(y2.reshape(ho * wo, tb, cp), axis=0) * (1.0 / (ho * wo))

    # ---- classifier: Linear(64->32)+ReLU, then Linear(32->1) as a lane reduce
    h = jnp.dot(pooled.astype(jnp.bfloat16), fc1w_ref[...],
                preferred_element_type=jnp.float32)
    h = jnp.maximum(h + fc1b_ref[...], 0.0)                        # (tb, cp) f32
    out = jnp.sum(h * fc2w_ref[...], axis=-1, keepdims=True) + fc2b_ref[...]   # (tb, 1)
    # Lane-dense (unmasked) store: broadcast the scalar across the 128 lanes.
    o_ref[...] = jnp.broadcast_to(out, (tb, cp)).astype(o_ref.dtype)


def _pick_tb(batch):
    # tb=8 keeps a single step for tiny batches (launch-latency bound anyway)
    # and >=2 'parallel' grid steps as soon as B > 8; tb=16 gives conv2 GEMM
    # M=256 rows (fills the v6e/v7x 256-wide MXU) for larger batches.
    return 8 if batch <= 16 else 16


# ----------------------------------------------------------------------------
# Forward pass of MetaModel
# ----------------------------------------------------------------------------
def meta_model_forward(x_nchw, params):
    f32, bf16 = jnp.float32, jnp.bfloat16

    B, cin, H, W = x_nchw.shape
    x = jnp.transpose(x_nchw, (0, 2, 3, 1)).astype(f32)            # NCHW -> NHWC

    h1 = (H + 2 - 3) // 2 + 1
    w1s = (W + 2 - 3) // 2 + 1
    ho = (h1 + 2 - 3) // 2 + 1
    wo = (w1s + 2 - 3) // 2 + 1
    assert h1 % 2 == 0 and w1s % 2 == 0, "parity-split layout assumes even conv1 output"

    c1 = params["conv1_w"].shape[0]          # 32
    c2 = params["conv2_w"].shape[0]          # 64
    hdim = params["fc1_w"].shape[1]          # 32

    # pad batch to a multiple of the batch tile (padded rows discarded at the end)
    tb = _pick_tb(B)
    bp = ((B + tb - 1) // tb) * tb
    if bp != B:
        x = jnp.pad(x, ((0, bp - B), (0, 0), (0, 0), (0, 0)))

    # conv1 im2col in the wrapper over the tiny raw input; rows ordered (h, w, b)
    # so the batch dim sits in the sublane slot and spatial dims stay untiled.
    xp = jnp.pad(x, ((0, 0), (1, 1), (1, 1), (0, 0)))
    cols = [xp[:, dh:dh + 2 * h1:2, dw:dw + 2 * w1s:2, :]
            for dh in range(3) for dw in range(3)]
    patches = jnp.concatenate(cols, axis=-1)                       # (bp, h1, w1s, 9*cin)
    patches = jnp.transpose(patches, (1, 2, 0, 3))                 # (h1, w1s, bp, 9*cin)
    k1 = 9 * cin
    kp1 = ((k1 + 63) // 64) * 64                                   # 36 -> 64 (not 128)
    patches = jnp.pad(patches, ((0, 0), (0, 0), (0, 0), (0, kp1 - k1))).astype(bf16)

    # lane-dense (128-padded-channel) weight packing, bf16 for the MXU
    w1g = jnp.transpose(params["conv1_w"], (2, 3, 1, 0)).reshape(k1, c1)
    w1p = jnp.zeros((kp1, CP), f32).at[:k1, :c1].set(w1g).astype(bf16)
    b1p = jnp.zeros((1, CP), f32).at[0, :c1].set(params["conv1_b"])

    w2g = jnp.zeros((3, 3, CP, CP), f32).at[:, :, :c1, :c2].set(
        jnp.transpose(params["conv2_w"], (2, 3, 1, 0)))
    w2p = w2g.reshape(9 * CP, CP).astype(bf16)
    b2p = jnp.zeros((1, CP), f32).at[0, :c2].set(params["conv2_b"])

    fc1wp = jnp.zeros((CP, CP), f32).at[:c2, :hdim].set(params["fc1_w"]).astype(bf16)
    fc1bp = jnp.zeros((1, CP), f32).at[0, :hdim].set(params["fc1_b"])
    fc2wp = jnp.zeros((1, CP), f32).at[0, :hdim].set(params["fc2_w"][:, 0])
    fc2bp = params["fc2_b"].reshape(1, 1).astype(f32)

    kern = functools.partial(_fused_meta_kernel, h1=h1, w1s=w1s, ho=ho, wo=wo)
    flops_per_sample = 2 * (h1 * w1s * kp1 * CP + ho * wo * 9 * CP * CP + CP * CP + CP)
    cost = pl.CostEstimate(
        flops=bp * flops_per_sample,
        transcendentals=0,
        bytes_accessed=(patches.size * 2 + w1p.size * 2 + w2p.size * 2
                        + fc1wp.size * 2
                        + (b1p.size + b2p.size + fc1bp.size + fc2wp.size + 1) * 4
                        + bp * CP * 4),
    )

    out_full = pl.pallas_call(
        kern,
        out_shape=jax.ShapeDtypeStruct((bp, CP), jnp.float32),
        grid=(bp // tb,),
        in_specs=[
            pl.BlockSpec((h1, w1s, tb, kp1), lambda b: (0, 0, b, 0)),   # conv1 patches
            pl.BlockSpec((kp1, CP), lambda b: (0, 0)),                  # w1
            pl.BlockSpec((1, CP), lambda b: (0, 0)),                    # b1
            pl.BlockSpec((9 * CP, CP), lambda b: (0, 0)),               # w2 (im2col)
            pl.BlockSpec((1, CP), lambda b: (0, 0)),                    # b2
            pl.BlockSpec((CP, CP), lambda b: (0, 0)),                   # fc1 w
            pl.BlockSpec((1, CP), lambda b: (0, 0)),                    # fc1 b
            pl.BlockSpec((1, CP), lambda b: (0, 0)),                    # fc2 w (row)
            pl.BlockSpec((1, 1), lambda b: (0, 0)),                     # fc2 b
        ],
        out_specs=pl.BlockSpec((tb, CP), lambda b: (b, 0)),
        compiler_params=pltpu.CompilerParams(
            dimension_semantics=("parallel",),
            vmem_limit_bytes=VMEM_LIMIT,
        ),
        cost_estimate=cost,
    )(patches, w1p, b1p, w2p, b2p, fc1wp, fc1bp, fc2wp, fc2bp)

    # encoder(x).squeeze() -> classifier -> .squeeze(-1): (B,)
    return out_full[:B, 0]


def init_params(key):
    ks = jax.random.split(key, 8)
    scale = 0.1
    return {
        # PyTorch conv weight layout [C_out, C_in, kh, kw]
        "conv1_w": scale * jax.random.normal(ks[0], (32, 4, 3, 3), jnp.float32),
        "conv1_b": scale * jax.random.normal(ks[1], (32,), jnp.float32),
        "conv2_w": scale * jax.random.normal(ks[2], (64, 32, 3, 3), jnp.float32),
        "conv2_b": scale * jax.random.normal(ks[3], (64,), jnp.float32),
        # Linear weights stored already transposed to [in, out] for the GEMM
        "fc1_w": scale * jax.random.normal(ks[4], (64, 32), jnp.float32),
        "fc1_b": scale * jax.random.normal(ks[5], (32,), jnp.float32),
        "fc2_w": scale * jax.random.normal(ks[6], (32, 1), jnp.float32),
        "fc2_b": scale * jax.random.normal(ks[7], (1,), jnp.float32),
    }


if __name__ == "__main__":
    key = jax.random.PRNGKey(0)
    k_x, k_p = jax.random.split(key)
    x = jax.random.normal(k_x, (2, 4, 16, 16), jnp.float32)   # NCHW, like PyTorch
    params = init_params(k_p)

    out = jax.jit(meta_model_forward)(x, params)
    out = jax.block_until_ready(out)
    assert out.shape == (2,), out.shape
    print("KERNEL_OK")
</pallas_src>

<mosaic_0001>
module attributes {stable_mosaic.version = 11 : i64} {
  func.func @_fused_meta_kernel(%arg0: i32, %arg1: memref<8x8x8x64xbf16, #tpu.memory_space<vmem>>, %arg2: memref<64x128xbf16, #tpu.memory_space<vmem>>, %arg3: memref<1x128xf32, #tpu.memory_space<vmem>>, %arg4: memref<1152x128xbf16, #tpu.memory_space<vmem>>, %arg5: memref<1x128xf32, #tpu.memory_space<vmem>>, %arg6: memref<128x128xbf16, #tpu.memory_space<vmem>>, %arg7: memref<1x128xf32, #tpu.memory_space<vmem>>, %arg8: memref<1x128xf32, #tpu.memory_space<vmem>>, %arg9: memref<1x1xf32, #tpu.memory_space<vmem>>, %arg10: memref<8x128xf32, #tpu.memory_space<vmem>>) attributes {dimension_semantics = [#tpu.dimension_semantics<parallel>], iteration_bounds = array<i64: 1>, scalar_prefetch = 0 : i64, scratch_operands = 0 : i64, tpu.core_type = #tpu.core_type<tc>, window_params = [{transform_indices = @transform_0, window_bounds = array<i64: 8, 8, 8, 64>}, {pipeline_mode = #tpu.pipeline_mode<synchronous>, transform_indices = @transform_1, window_bounds = array<i64: 64, 128>}, {pipeline_mode = #tpu.pipeline_mode<synchronous>, transform_indices = @transform_2, window_bounds = array<i64: 1, 128>}, {pipeline_mode = #tpu.pipeline_mode<synchronous>, transform_indices = @transform_3, window_bounds = array<i64: 1152, 128>}, {pipeline_mode = #tpu.pipeline_mode<synchronous>, transform_indices = @transform_4, window_bounds = array<i64: 1, 128>}, {pipeline_mode = #tpu.pipeline_mode<synchronous>, transform_indices = @transform_5, window_bounds = array<i64: 128, 128>}, {pipeline_mode = #tpu.pipeline_mode<synchronous>, transform_indices = @transform_6, window_bounds = array<i64: 1, 128>}, {pipeline_mode = #tpu.pipeline_mode<synchronous>, transform_indices = @transform_7, window_bounds = array<i64: 1, 128>}, {pipeline_mode = #tpu.pipeline_mode<synchronous>, transform_indices = @transform_8, window_bounds = array<i64: 1, 1>}, {transform_indices = @transform_9, window_bounds = array<i64: 8, 128>}]} {
    %c0 = arith.constant 0 : index
    %c0_0 = arith.constant 0 : index
    %c0_1 = arith.constant 0 : index
    %c0_2 = arith.constant 0 : index
    %0 = vector.load %arg1[%c0, %c0_0, %c0_1, %c0_2] : memref<8x8x8x64xbf16, #tpu.memory_space<vmem>>, vector<8x8x8x64xbf16>
    %1 = vector.shape_cast %0 : vector<8x8x8x64xbf16> to vector<512x64xbf16>
    %c0_3 = arith.constant 0 : index
    %c0_4 = arith.constant 0 : index
    %2 = vector.load %arg2[%c0_3, %c0_4] : memref<64x128xbf16, #tpu.memory_space<vmem>>, vector<64x128xbf16>
    %cst = arith.constant dense<0.000000e+00> : vector<512x128xf32>
    %3 = tpu.matmul %1, %2, %cst {dimension_numbers = #tpu.dot_dimension_numbers<[1], [0], [0], [1], [0, 0, 1, 1], [], []>} : vector<512x64xbf16>, vector<64x128xbf16>, vector<512x128xf32> -> vector<512x128xf32>
    %c0_5 = arith.constant 0 : index
    %c0_6 = arith.constant 0 : index
    %4 = vector.load %arg3[%c0_5, %c0_6] : memref<1x128xf32, #tpu.memory_space<vmem>>, vector<1x128xf32>
    %5 = vector.broadcast %4 : vector<1x128xf32> to vector<512x128xf32>
    %6 = arith.addf %3, %5 : vector<512x128xf32>
    %cst_7 = arith.constant 0.000000e+00 : f32
    %7 = vector.broadcast %cst_7 : f32 to vector<512x128xf32>
    %8 = arith.maximumf %6, %7 : vector<512x128xf32>
    %9 = vector.shape_cast %8 : vector<512x128xf32> to vector<8x8x8x128xf32>
    %cst_8 = arith.constant 0.000000e+00 : f32
    %10 = vector.broadcast %cst_8 : f32 to vector<1x8x8x128xf32>
    %11 = tpu.concatenate %10, %9, %10 in 0 : vector<1x8x8x128xf32>, vector<8x8x8x128xf32>, vector<1x8x8x128xf32> -> vector<10x8x8x128xf32>
    %cst_9 = arith.constant 0.000000e+00 : f32
    %12 = vector.broadcast %cst_9 : f32 to vector<10x1x8x128xf32>
    %13 = tpu.concatenate %12, %11, %12 in 1 : vector<10x1x8x128xf32>, vector<10x8x8x128xf32>, vector<10x1x8x128xf32> -> vector<10x10x8x128xf32>
    %14 = vector.shape_cast %13 : vector<10x10x8x128xf32> to vector<5x2x5x2x8x128xf32>
    %15 = vector.extract_strided_slice %14 {offsets = [0, 0, 0, 0, 0, 0], sizes = [4, 1, 4, 1, 8, 128], strides = [1, 1, 1, 1, 1, 1]} : vector<5x2x5x2x8x128xf32> to vector<4x1x4x1x8x128xf32>
    %16 = vector.shape_cast %15 : vector<4x1x4x1x8x128xf32> to vector<4x4x8x128xf32>
    %17 = vector.extract_strided_slice %14 {offsets = [0, 0, 0, 1, 0, 0], sizes = [4, 1, 4, 1, 8, 128], strides = [1, 1, 1, 1, 1, 1]} : vector<5x2x5x2x8x128xf32> to vector<4x1x4x1x8x128xf32>
    %18 = vector.shape_cast %17 : vector<4x1x4x1x8x128xf32> to vector<4x4x8x128xf32>
    %19 = vector.extract_strided_slice %14 {offsets = [0, 0, 1, 0, 0, 0], sizes = [4, 1, 4, 1, 8, 128], strides = [1, 1, 1, 1, 1, 1]} : vector<5x2x5x2x8x128xf32> to vector<4x1x4x1x8x128xf32>
    %20 = vector.shape_cast %19 : vector<4x1x4x1x8x128xf32> to vector<4x4x8x128xf32>
    %21 = vector.extract_strided_slice %14 {offsets = [0, 1, 0, 0, 0, 0], sizes = [4, 1, 4, 1, 8, 128], strides = [1, 1, 1, 1, 1, 1]} : vector<5x2x5x2x8x128xf32> to vector<4x1x4x1x8x128xf32>
    %22 = vector.shape_cast %21 : vector<4x1x4x1x8x128xf32> to vector<4x4x8x128xf32>
    %23 = vector.extract_strided_slice %14 {offsets = [0, 1, 0, 1, 0, 0], sizes = [4, 1, 4, 1, 8, 128], strides = [1, 1, 1, 1, 1, 1]} : vector<5x2x5x2x8x128xf32> to vector<4x1x4x1x8x128xf32>
    %24 = vector.shape_cast %23 : vector<4x1x4x1x8x128xf32> to vector<4x4x8x128xf32>
    %25 = vector.extract_strided_slice %14 {offsets = [0, 1, 1, 0, 0, 0], sizes = [4, 1, 4, 1, 8, 128], strides = [1, 1, 1, 1, 1, 1]} : vector<5x2x5x2x8x128xf32> to vector<4x1x4x1x8x128xf32>
    %26 = vector.shape_cast %25 : vector<4x1x4x1x8x128xf32> to vector<4x4x8x128xf32>
    %27 = vector.extract_strided_slice %14 {offsets = [1, 0, 0, 0, 0, 0], sizes = [4, 1, 4, 1, 8, 128], strides = [1, 1, 1, 1, 1, 1]} : vector<5x2x5x2x8x128xf32> to vector<4x1x4x1x8x128xf32>
    %28 = vector.shape_cast %27 : vector<4x1x4x1x8x128xf32> to vector<4x4x8x128xf32>
    %29 = vector.extract_strided_slice %14 {offsets = [1, 0, 0, 1, 0, 0], sizes = [4, 1, 4, 1, 8, 128], strides = [1, 1, 1, 1, 1, 1]} : vector<5x2x5x2x8x128xf32> to vector<4x1x4x1x8x128xf32>
    %30 = vector.shape_cast %29 : vector<4x1x4x1x8x128xf32> to vector<4x4x8x128xf32>
    %31 = vector.extract_strided_slice %14 {offsets = [1, 0, 1, 0, 0, 0], sizes = [4, 1, 4, 1, 8, 128], strides = [1, 1, 1, 1, 1, 1]} : vector<5x2x5x2x8x128xf32> to vector<4x1x4x1x8x128xf32>
    %32 = vector.shape_cast %31 : vector<4x1x4x1x8x128xf32> to vector<4x4x8x128xf32>
    %33 = tpu.concatenate %16, %18, %20, %22, %24, %26, %28, %30, %32 in 3 : vector<4x4x8x128xf32>, vector<4x4x8x128xf32>, vector<4x4x8x128xf32>, vector<4x4x8x128xf32>, vector<4x4x8x128xf32>, vector<4x4x8x128xf32>, vector<4x4x8x128xf32>, vector<4x4x8x128xf32>, vector<4x4x8x128xf32> -> vector<4x4x8x1152xf32>
    %34 = vector.shape_cast %33 : vector<4x4x8x1152xf32> to vector<128x1152xf32>
    %35 = arith.truncf %34 : vector<128x1152xf32> to vector<128x1152xbf16>
    %c0_10 = arith.constant 0 : index
    %c0_11 = arith.constant 0 : index
    %36 = vector.load %arg4[%c0_10, %c0_11] : memref<1152x128xbf16, #tpu.memory_space<vmem>>, vector<1152x128xbf16>
    %cst_12 = arith.constant dense<0.000000e+00> : vector<128x128xf32>
    %37 = tpu.matmul %35, %36, %cst_12 {dimension_numbers = #tpu.dot_dimension_numbers<[1], [0], [0], [1], [0, 0, 1, 1], [], []>} : vector<128x1152xbf16>, vector<1152x128xbf16>, vector<128x128xf32> -> vector<128x128xf32>
    %c0_13 = arith.constant 0 : index
    %c0_14 = arith.constant 0 : index
    %38 = vector.load %arg5[%c0_13, %c0_14] : memref<1x128xf32, #tpu.memory_space<vmem>>, vector<1x128xf32>
    %39 = vector.broadcast %38 : vector<1x128xf32> to vector<128x128xf32>
    %40 = arith.addf %37, %39 : vector<128x128xf32>
    %cst_15 = arith.constant 0.000000e+00 : f32
    %41 = vector.broadcast %cst_15 : f32 to vector<128x128xf32>
    %42 = arith.maximumf %40, %41 : vector<128x128xf32>
    %43 = vector.shape_cast %42 : vector<128x128xf32> to vector<16x8x128xf32>
    %cst_16 = arith.constant dense<0.000000e+00> : vector<8x128xf32>
    %44 = vector.multi_reduction <add>, %43, %cst_16 [0] : vector<16x8x128xf32> to vector<8x128xf32>
    %cst_17 = arith.constant 6.250000e-02 : f32
    %45 = vector.broadcast %cst_17 : f32 to vector<8x128xf32>
    %46 = arith.mulf %44, %45 : vector<8x128xf32>
    %47 = arith.truncf %46 : vector<8x128xf32> to vector<8x128xbf16>
    %c0_18 = arith.constant 0 : index
    %c0_19 = arith.constant 0 : index
    %48 = vector.load %arg6[%c0_18, %c0_19] : memref<128x128xbf16, #tpu.memory_space<vmem>>, vector<128x128xbf16>
    %cst_20 = arith.constant dense<0.000000e+00> : vector<8x128xf32>
    %49 = tpu.matmul %47, %48, %cst_20 {dimension_numbers = #tpu.dot_dimension_numbers<[1], [0], [0], [1], [0, 0, 1, 1], [], []>} : vector<8x128xbf16>, vector<128x128xbf16>, vector<8x128xf32> -> vector<8x128xf32>
    %c0_21 = arith.constant 0 : index
    %c0_22 = arith.constant 0 : index
    %50 = vector.load %arg7[%c0_21, %c0_22] : memref<1x128xf32, #tpu.memory_space<vmem>>, vector<1x128xf32>
    %51 = vector.broadcast %50 : vector<1x128xf32> to vector<8x128xf32>
    %52 = arith.addf %49, %51 : vector<8x128xf32>
    %cst_23 = arith.constant 0.000000e+00 : f32
    %53 = vector.broadcast %cst_23 : f32 to vector<8x128xf32>
    %54 = arith.maximumf %52, %53 : vector<8x128xf32>
    %c0_24 = arith.constant 0 : index
    %c0_25 = arith.constant 0 : index
    %55 = vector.load %arg8[%c0_24, %c0_25] : memref<1x128xf32, #tpu.memory_space<vmem>>, vector<1x128xf32>
    %56 = vector.broadcast %55 : vector<1x128xf32> to vector<8x128xf32>
    %57 = arith.mulf %54, %56 : vector<8x128xf32>
    %cst_26 = arith.constant dense<0.000000e+00> : vector<8xf32>
    %58 = vector.multi_reduction <add>, %57, %cst_26 [1] : vector<8x128xf32> to vector<8xf32>
    %59 = vector.shape_cast %58 : vector<8xf32> to vector<8x1xf32>
    %c0_27 = arith.constant 0 : index
    %c0_28 = arith.constant 0 : index
    %60 = vector.load %arg9[%c0_27, %c0_28] : memref<1x1xf32, #tpu.memory_space<vmem>>, vector<1x1xf32>
    %61 = vector.broadcast %60 : vector<1x1xf32> to vector<8x1xf32>
    %62 = arith.addf %59, %61 : vector<8x1xf32>
    %63 = vector.shape_cast %62 : vector<8x1xf32> to vector<8x1xf32>
    %64 = vector.broadcast %63 : vector<8x1xf32> to vector<8x128xf32>
    %c0_29 = arith.constant 0 : index
    %c0_30 = arith.constant 0 : index
    %65 = vector.load %arg10[%c0_29, %c0_30] : memref<8x128xf32, #tpu.memory_space<vmem>>, vector<8x128xf32>
    tpu.vector_store %arg10[%c0_29, %c0_30], %64 {strides = array<i32>} : memref<8x128xf32, #tpu.memory_space<vmem>>, vector<8x128xf32>,
    return
  }
  func.func @transform_0(%arg0: i32) -> (i32, i32, i32, i32) {
    %c0_i32 = arith.constant 0 : i32
    %c0_i32_0 = arith.constant 0 : i32
    %c0_i32_1 = arith.constant 0 : i32
    %c0_i32_2 = arith.constant 0 : i32
    return %c0_i32, %c0_i32_0, %arg0, %c0_i32_1 : i32, i32, i32, i32
  }
  func.func @transform_1(%arg0: i32) -> (i32, i32) {
    %c0_i32 = arith.constant 0 : i32
    %c0_i32_0 = arith.constant 0 : i32
    %c0_i32_1 = arith.constant 0 : i32
    return %c0_i32, %c0_i32_0 : i32, i32
  }
  func.func @transform_2(%arg0: i32) -> (i32, i32) {
    %c0_i32 = arith.constant 0 : i32
    %c0_i32_0 = arith.constant 0 : i32
    %c0_i32_1 = arith.constant 0 : i32
    return %c0_i32, %c0_i32_0 : i32, i32
  }
  func.func @transform_3(%arg0: i32) -> (i32, i32) {
    %c0_i32 = arith.constant 0 : i32
    %c0_i32_0 = arith.constant 0 : i32
    %c0_i32_1 = arith.constant 0 : i32
    return %c0_i32, %c0_i32_0 : i32, i32
  }
  func.func @transform_4(%arg0: i32) -> (i32, i32) {
    %c0_i32 = arith.constant 0 : i32
    %c0_i32_0 = arith.constant 0 : i32
    %c0_i32_1 = arith.constant 0 : i32
    return %c0_i32, %c0_i32_0 : i32, i32
  }
  func.func @transform_5(%arg0: i32) -> (i32, i32) {
    %c0_i32 = arith.constant 0 : i32
    %c0_i32_0 = arith.constant 0 : i32
    %c0_i32_1 = arith.constant 0 : i32
    return %c0_i32, %c0_i32_0 : i32, i32
  }
  func.func @transform_6(%arg0: i32) -> (i32, i32) {
    %c0_i32 = arith.constant 0 : i32
    %c0_i32_0 = arith.constant 0 : i32
    %c0_i32_1 = arith.constant 0 : i32
    return %c0_i32, %c0_i32_0 : i32, i32
  }
  func.func @transform_7(%arg0: i32) -> (i32, i32) {
    %c0_i32 = arith.constant 0 : i32
    %c0_i32_0 = arith.constant 0 : i32
    %c0_i32_1 = arith.constant 0 : i32
    return %c0_i32, %c0_i32_0 : i32, i32
  }
  func.func @transform_8(%arg0: i32) -> (i32, i32) {
    %c0_i32 = arith.constant 0 : i32
    %c0_i32_0 = arith.constant 0 : i32
    %c0_i32_1 = arith.constant 0 : i32
    return %c0_i32, %c0_i32_0 : i32, i32
  }
  func.func @transform_9(%arg0: i32) -> (i32, i32) {
    %c0_i32 = arith.constant 0 : i32
    %c0_i32_0 = arith.constant 0 : i32
    return %arg0, %c0_i32 : i32, i32
  }
}

</mosaic_0001>

<bundles_post_ra>
// kernel: meta_model_forward.1
= control target key start
LH: loop header
LB: loop body
LE: loop exit
PB: predicated region body
PF: predicated region fallthrough
CT: control target
= control target key end

     0   :  { %vm298_vm0 = vcmask 523264   ;;  %v2753_v62 = vmov 0.0|0.0   ;;  %vm2755_vm1 = vmmov 0   ;;  %s3626_s1 = inlined_call_operand.vmem [shape: bf16[64,128], index: 1, kind: input, shape index: {}]   ;;  %s3627_s0 = inlined_call_operand.vmem [shape: bf16[8,8,8,64], index: 0, kind: input, shape index: {}]   ;;  %s3628_s3 = inlined_call_operand.vmem [shape: bf16[1152,128], index: 3, kind: input, shape index: {}]   ;;  %s3629_s2 = inlined_call_operand.vmem [shape: f32[1,128], index: 2, kind: input, shape index: {}]   ;;  %s3630_s5 = inlined_call_operand.vmem [shape: bf16[128,128], index: 5, kind: input, shape index: {}]   ;;  %s3631_s4 = inlined_call_operand.vmem [shape: f32[1,128], index: 4, kind: input, shape index: {}]   ;;  %s3632_s8 = inlined_call_operand.<no memory space> [shape: f32[1,1], index: 8, kind: input, shape index: {}]   ;;  %s3633_s6 = inlined_call_operand.vmem [shape: f32[1,128], index: 6, kind: input, shape index: {}]   ;;  %s3634_s7 = inlined_call_operand.vmem [shape: f32[1,128], index: 7, kind: input, shape index: {}]   ;;  %s3635_s9 = inlined_call_operand.vmem [shape: f32[8,128], index: 9, kind: output, shape index: {}]  }
   0x1   :  { %v2637_v0 = vld [vmem:[%s3626_s1] sm:$0xff]   ;;  %v2638_v1 = vld [vmem:[%s3626_s1 + $0x8] sm:$0xff]   ;;  %v2639_v2 = vld [vmem:[%s3626_s1 + $0x10] sm:$0xff]   ;;  %1412 = vmatprep.mubr.bf16.mxu1 %v2753_v62 }
   0x2   :  { %2508 = vmatprep.subr.bf16.mxu0 %v2637_v0  ;;  %v2641_v3 = vld [vmem:[%s3627_s0] sm:$0xff]   ;;  %v2640_v4 = vld [vmem:[%s3626_s1 + $0x18] sm:$0xff]   ;;  %v2642_v5 = vld [vmem:[%s3627_s0 + $0x8] sm:$0xff]  }
   0x3   :  { %2509 = vmatpush3.bf16.msra.mxu0 %v2637_v0  ;;  %2516 = vmatprep.mubr.msk.bf16.mxu0 %vm298_vm0, %v2641_v3  ;;  %v2643_v6 = vld [vmem:[%s3627_s0 + $0x10] sm:$0xff]   ;;  %v2644_v7 = vld [vmem:[%s3627_s0 + $0x18] sm:$0xff]   ;;  %v2645_v8 = vld [vmem:[%s3627_s0 + $0x20] sm:$0xff]  }
   0x4   :  { %2510 = vmatprep.subr.bf16.mxu0 %v2638_v1  ;;  %v2646_v9 = vld [vmem:[%s3627_s0 + $0x28] sm:$0xff]   ;;  %v2647_v10 = vld [vmem:[%s3627_s0 + $0x30] sm:$0xff]   ;;  %v2669_v11 = vld [vmem:[%s3628_s3 + $0x40] sm:$0xff]  }
   0x5   :  { %v2670_v12 = vld [vmem:[%s3628_s3] sm:$0xff]   ;;  %2227 = vmatprep.subr.bf16.mxu1 %v2669_v11  ;;  %v2648_v15 = vld [vmem:[%s3627_s0 + $0x38] sm:$0xff]   ;;  %v2673_v16 = vld [vmem:[%s3628_s3 + $0x48] sm:$0xff]  }
   0x6   :  { %v2671_v13 = vld [vmem:[%s3628_s3 + $0x140] sm:$0xff]   ;;  %2228 = vmatpush3.bf16.msra.mxu1 %v2670_v12  ;;  %v2674_v18 = vld [vmem:[%s3628_s3 + $0x8] sm:$0xff]   ;;  %v2679_v21 = vld [vmem:[%s3628_s3 + $0x50] sm:$0xff]  }
   0x7   :  { %2511 = vmatpush3.bf16.msra.mxu0 %v2638_v1  ;;  %v2672_v14 = vld [vmem:[%s3628_s3 + $0x100] sm:$0xff]   ;;  %2229 = vmatprep.subr.bf16.mxu1 %v2673_v16  ;;  %v2675_v19 = vld [vmem:[%s3628_s3 + $0x148] sm:$0xff]   ;;  %v2680_v22 = vld [vmem:[%s3628_s3 + $0x10] sm:$0xff]  }
   0x8   :  { %2512 = vmatprep.subr.bf16.mxu0 %v2639_v2  ;;  %v2649_v17 = vld [vmem:[%s3627_s0 + $0x40] sm:$0xff]   ;;  %v2676_v20 = vld [vmem:[%s3628_s3 + $0x108] sm:$0xff]   ;;  %v2681_v24 = vld [vmem:[%s3628_s3 + $0x150] sm:$0xff]  }
   0x9   :  { %v2650_v23 = vld [vmem:[%s3627_s0 + $0x48] sm:$0xff]   ;;  %v2651_v25 = vld [vmem:[%s3627_s0 + $0x50] sm:$0xff]   ;;  %v2683_v27 = vld [vmem:[%s3628_s3 + $0x58] sm:$0xff]  }
   0xa   :  { %2230 = vmatpush3.bf16.msra.mxu1 %v2674_v18  ;;  %v2682_v26 = vld [vmem:[%s3628_s3 + $0x110] sm:$0xff]   ;;  %v2684_v28 = vld [vmem:[%s3628_s3 + $0x18] sm:$0xff]   ;;  %v2689_v32 = vld [vmem:[%s3628_s3 + $0x60] sm:$0xff]  }
   0xb   :  { %2513 = vmatpush3.bf16.msra.mxu0 %v2639_v2  ;;  %2231 = vmatprep.subr.bf16.mxu1 %v2679_v21  ;;  %v2685_v29 = vld [vmem:[%s3628_s3 + $0x158] sm:$0xff]   ;;  %v2653_v33 = vld [vmem:[%s3627_s0 + $0x60] sm:$0xff]   ;;  %v2693_v37 = vld [vmem:[%s3628_s3 + $0x68] sm:$0xff]  }
   0xc   :  { %2514 = vmatprep.subr.bf16.mxu0 %v2640_v4  ;;  %v2686_v30 = vld [vmem:[%s3628_s3 + $0x118] sm:$0xff]   ;;  %v2690_v34 = vld [vmem:[%s3628_s3 + $0x20] sm:$0xff]   ;;  %v2694_v38 = vld [vmem:[%s3628_s3 + $0x28] sm:$0xff]  }
   0xd   :  { %v2652_v31 = vld [vmem:[%s3627_s0 + $0x58] sm:$0xff]   ;;  %v2691_v35 = vld [vmem:[%s3628_s3 + $0x160] sm:$0xff]   ;;  %v2695_v39 = vld [vmem:[%s3628_s3 + $0x168] sm:$0xff]  }
   0xe   :  { %2232 = vmatpush3.bf16.msra.mxu1 %v2680_v22  ;;  %v2692_v36 = vld [vmem:[%s3628_s3 + $0x120] sm:$0xff]   ;;  %v2654_v40 = vld [vmem:[%s3627_s0 + $0x68] sm:$0xff]   ;;  %v2655_v41 = vld [vmem:[%s3627_s0 + $0x70] sm:$0xff]  }
   0xf   :  { %2515 = vmatpush3.bf16.msra.mxu0 %v2640_v4  ;;  %2233 = vmatprep.subr.bf16.mxu1 %v2683_v27  ;;  %v2656_v42 = vld [vmem:[%s3627_s0 + $0x78] sm:$0xff]   ;;  %v2657_v43 = vld [vmem:[%s3627_s0 + $0x80] sm:$0xff]   ;;  %v2658_v44 = vld [vmem:[%s3627_s0 + $0x88] sm:$0xff]  }
  0x10   :  { %2355 = vmatprep.subr.bf16.mxu0 %v2671_v13  ;;  %v2659_v45 = vld [vmem:[%s3627_s0 + $0x90] sm:$0xff]   ;;  %v2660_v46 = vld [vmem:[%s3627_s0 + $0x98] sm:$0xff]   ;;  %v2661_v47 = vld [vmem:[%s3627_s0 + $0xa0] sm:$0xff]  }
  0x11   :  { %v2662_v48 = vld [vmem:[%s3627_s0 + $0xa8] sm:$0xff]   ;;  %v2663_v49 = vld [vmem:[%s3627_s0 + $0xb0] sm:$0xff]   ;;  %v2664_v52 = vld [vmem:[%s3627_s0 + $0xb8] sm:$0xff]  }
  0x12   :  { %2517 = vmatmul.mubr.msk.bf16.vlgmr.msra.gmra.mrb[0].mxu0 %vm298_vm0, %v2642_v5  ;;  %2234 = vmatpush3.bf16.msra.mxu1 %v2684_v28  ;;  %v2696_v50 = vld [vmem:[%s3628_s3 + $0x128] sm:$0xff]   ;;  %v2697_v51 = vld [vmem:[%s3628_s3 + $0x70] sm:$0xff]   ;;  %v2665_v55 = vld [vmem:[%s3627_s0 + $0xc0] sm:$0xff]  }
  0x13   :  { %2520 = vmatprep.mubr.msk.bf16.mxu0 %vm298_vm0, %v2643_v6  ;;  %2356 = vmatpush3.bf16.msra.mxu0 %v2672_v14  ;;  %v2698_v53 = vld [vmem:[%s3628_s3 + $0x30] sm:$0xff]   ;;  %v2701_v57 = vld [vmem:[%s3628_s3 + $0x78] sm:$0xff]   ;;  %v2666_v61 = vld [vmem:[%s3627_s0 + $0xc8] sm:$0xff]  }
  0x14   :  { %2357 = vmatprep.subr.bf16.mxu0 %v2675_v19  ;;  %2235 = vmatprep.subr.bf16.mxu1 %v2689_v32  ;;  %v2699_v54 = vld [vmem:[%s3628_s3 + $0x170] sm:$0xff]   ;;  %v2702_v58 = vld [vmem:[%s3628_s3 + $0x38] sm:$0xff]   ;;  %v2677_v1 = vld [vmem:[%s3627_s0 + $0xe0] sm:$0xff]  }
  0x15   :  { %v2700_v56 = vld [vmem:[%s3628_s3 + $0x130] sm:$0xff]   ;;  %v2703_v59 = vld [vmem:[%s3628_s3 + $0x178] sm:$0xff]   ;;  %v2678_v2 = vld [vmem:[%s3627_s0 + $0xe8] sm:$0xff]  }
  0x16   :  { %2236 = vmatpush3.bf16.msra.mxu1 %v2690_v34  ;;  %v2704_v60 = vld [vmem:[%s3628_s3 + $0x138] sm:$0xff]   ;;  %v2667_v63 = vld [vmem:[%s3627_s0 + $0xd0] sm:$0xff]   ;;  %v2705_v5 = vld [vmem:[%s3628_s3 + $0xc0] sm:$0xff]  }
  0x17   :  { %2358 = vmatpush3.bf16.msra.mxu0 %v2676_v20  ;;  %2237 = vmatprep.subr.bf16.mxu1 %v2693_v37  ;;  %v2668_v0 = vld [vmem:[%s3627_s0 + $0xd8] sm:$0xff]   ;;  %v2687_v3 = vld [vmem:[%s3627_s0 + $0xf0] sm:$0xff]   ;;  %v2706_v6 = vld [vmem:[%s3628_s3 + $0x80] sm:$0xff]  }
  0x18   :  { %2359 = vmatprep.subr.bf16.mxu0 %v2681_v24  ;;  %v2688_v4 = vld [vmem:[%s3627_s0 + $0xf8] sm:$0xff]   ;;  %v2713_v13 = vld [vmem:[%s3628_s3 + $0xe0] sm:$0xff]   ;;  %v2716_v16 = vld [vmem:[%s3628_s3 + $0xa8] sm:$0xff]  }
  0x19   :  { %v2711_v11 = vld [vmem:[%s3628_s3 + $0xd8] sm:$0xff]   ;;  %v2714_v14 = vld [vmem:[%s3628_s3 + $0xa0] sm:$0xff]   ;;  %v2717_v18 = vld [vmem:[%s3628_s3 + $0xf0] sm:$0xff]  }
  0x1a   :  { %2521 = vmatmul.mubr.msk.bf16.gmra.mrb[4].mxu0 %vm298_vm0, %v2644_v7  ;;  %2238 = vmatpush3.bf16.msra.mxu1 %v2694_v38  ;;  %v2707_v7 = vld [vmem:[%s3628_s3 + $0xc8] sm:$0xff]   ;;  %v2712_v12 = vld [vmem:[%s3628_s3 + $0x98] sm:$0xff]   ;;  %v2718_v19 = vld [vmem:[%s3628_s3 + $0xb0] sm:$0xff]  }
  0x1b   :  { %2524 = vmatprep.mubr.msk.bf16.mxu0 %vm298_vm0, %v2645_v8  ;;  %2360 = vmatpush3.bf16.msra.mxu0 %v2682_v26  ;;  %v2708_v8 = vld [vmem:[%s3628_s3 + $0x88] sm:$0xff]   ;;  %v2721_v20 = vld [vmem:[%s3628_s3 + $0xf8] sm:$0xff]   ;;  %v2725_v22 = vld [vmem:[%s3628_s3 + $0x1c0] sm:$0xff]  }
  0x1c   :  { %2361 = vmatprep.subr.bf16.mxu0 %v2685_v29  ;;  %2239 = vmatprep.subr.bf16.mxu1 %v2697_v51  ;;  %v2722_v21 = vld [vmem:[%s3628_s3 + $0xb8] sm:$0xff]  }
  0x1e   :  { %2240 = vmatpush3.bf16.msra.mxu1 %v2698_v53 }
  0x1f   :  { %2362 = vmatpush3.bf16.msra.mxu0 %v2686_v30  ;;  %2241 = vmatprep.subr.bf16.mxu1 %v2701_v57 }
  0x20   :  { %2363 = vmatprep.subr.bf16.mxu0 %v2691_v35 }
  0x22   :  { %2525 = vmatmul.mubr.msk.bf16.gmra.mrb[8].mxu0 %vm298_vm0, %v2646_v9  ;;  %2242 = vmatpush3.bf16.msra.mxu1 %v2702_v58  ;;  %v2709_v9 = vld [vmem:[%s3628_s3 + $0xd0] sm:$0xff]   ;;  %v2724_v58 = vld [vmem:[%s3628_s3 + $0x218] sm:$0xff]  }
  0x23   :  { %2528 = vmatprep.mubr.msk.bf16.mxu0 %vm298_vm0, %v2647_v10  ;;  %2364 = vmatpush3.bf16.msra.mxu0 %v2692_v36  ;;  %v2710_v10 = vld [vmem:[%s3628_s3 + $0x90] sm:$0xff]  }
  0x24   :  { %2365 = vmatprep.subr.bf16.mxu0 %v2695_v39  ;;  %2291 = vmatprep.subr.bf16.mxu1 %v2705_v5 }
  0x25   :  { %1413 = vmatmul.mubr.bf16.vlgmr.msra.gmra.mrb[0].mxu1 %v2753_v62 }
  0x26   :  { %1420 = vmatprep.mubr.bf16.mxu1 %v2753_v62  ;;  %2292 = vmatpush3.bf16.msra.mxu1 %v2706_v6 }
  0x27   :  { %2366 = vmatpush3.bf16.msra.mxu0 %v2696_v50  ;;  %2293 = vmatprep.subr.bf16.mxu1 %v2707_v7  ;;  %v2723_v50 = vld [vmem:[%s3628_s3 + $0x210] sm:$0xff]   ;;  %v2754_v7 = vmov 0.0  }
  0x28   :  { %2367 = vmatprep.subr.bf16.mxu0 %v2699_v54 }
  0x2a   :  { %2529 = vmatmul.mubr.msk.bf16.gmra.mrb[12].mxu0 %vm298_vm0, %v2648_v15  ;;  %2294 = vmatpush3.bf16.msra.mxu1 %v2708_v8  ;;  %v2715_v15 = vld [vmem:[%s3628_s3 + $0xe8] sm:$0xff]  }
  0x2b   :  { %2532 = vmatprep.mubr.msk.bf16.mxu0 %vm298_vm0, %v2649_v17  ;;  %2368 = vmatpush3.bf16.msra.mxu0 %v2700_v56  ;;  %v2719_v17 = vld [vmem:[%s3628_s3 + $0x200] sm:$0xff]  }
  0x2c   :  { %2369 = vmatprep.subr.bf16.mxu0 %v2703_v59  ;;  %2295 = vmatprep.subr.bf16.mxu1 %v2709_v9 }
  0x2d   :  { %1421 = vmatmul.mubr.bf16.gmra.mrb[4].mxu1 %v2753_v62 }
  0x2e   :  { %2296 = vmatpush3.bf16.msra.mxu1 %v2710_v10 }
  0x2f   :  { %2370 = vmatpush3.bf16.msra.mxu0 %v2704_v60  ;;  %2297 = vmatprep.subr.bf16.mxu1 %v2711_v11 }
  0x30   :  { %2580 = vmatprep.subr.bf16.mxu0 %v2719_v17 }
  0x32   :  { %2533 = vmatmul.mubr.msk.bf16.gmra.mrb[16].mxu0 %vm298_vm0, %v2650_v23  ;;  %2298 = vmatpush3.bf16.msra.mxu1 %v2712_v12  ;;  %v3104_v23 = vld [vmem:[%s3629_s2] ss:$0 sm:$0xff] }
  0x33   :  { %2536 = vmatprep.mubr.msk.bf16.mxu0 %vm298_vm0, %v2651_v25  ;;  %2299 = vmatprep.subr.bf16.mxu1 %v2713_v13  ;;  %v2728_v13 = vld [vmem:[%s3628_s3 + $0x228] sm:$0xff]  }
  0x36   :  { %2300 = vmatpush3.bf16.msra.mxu1 %v2714_v14 }
  0x37   :  { %2301 = vmatprep.subr.bf16.mxu1 %v2715_v15 }
  0x3a   :  { %2537 = vmatmul.mubr.msk.bf16.gmra.mrb[20].mxu0 %vm298_vm0, %v2652_v31  ;;  %2302 = vmatpush3.bf16.msra.mxu1 %v2716_v16 }
  0x3b   :  { %2540 = vmatprep.mubr.msk.bf16.mxu0 %vm298_vm0, %v2653_v33  ;;  %2303 = vmatprep.subr.bf16.mxu1 %v2717_v18 }
  0x3e   :  { %2304 = vmatpush3.bf16.msra.mxu1 %v2718_v19 }
  0x3f   :  { %2305 = vmatprep.subr.bf16.mxu1 %v2721_v20 }
  0x42   :  { %2541 = vmatmul.mubr.msk.bf16.gmra.mrb[24].mxu0 %vm298_vm0, %v2654_v40  ;;  %2306 = vmatpush3.bf16.msra.mxu1 %v2722_v21 }
  0x43   :  { %2544 = vmatprep.mubr.msk.bf16.mxu0 %vm298_vm0, %v2655_v41  ;;  %2419 = vmatprep.subr.bf16.mxu1 %v2725_v22  ;;  %v2720_v41 = vld [vmem:[%s3628_s3 + $0x208] sm:$0xff]   ;;  %v2731_v22 = vld [vmem:[%s3628_s3 + $0x230] sm:$0xff]  }
  0x4a   :  { %2545 = vmatmul.mubr.msk.bf16.gmra.mrb[28].mxu0 %vm298_vm0, %v2656_v42 }
  0x4b   :  { %2548 = vmatprep.mubr.msk.bf16.mxu0 %vm298_vm0, %v2657_v43 }
  0x52   :  { %2549 = vmatmul.mubr.msk.bf16.gmra.mrb[32].mxu0 %vm298_vm0, %v2658_v44 }
  0x53   :  { %2552 = vmatprep.mubr.msk.bf16.mxu0 %vm298_vm0, %v2659_v45 }
  0x5a   :  { %2553 = vmatmul.mubr.msk.bf16.gmra.mrb[36].mxu0 %vm298_vm0, %v2660_v46 }
  0x5b   :  { %2556 = vmatprep.mubr.msk.bf16.mxu0 %vm298_vm0, %v2661_v47 }
  0x62   :  { %2557 = vmatmul.mubr.msk.bf16.gmra.mrb[40].mxu0 %vm298_vm0, %v2662_v48 }
  0x63   :  { %2560 = vmatprep.mubr.msk.bf16.mxu0 %vm298_vm0, %v2663_v49 }
  0x6a   :  { %2561 = vmatmul.mubr.msk.bf16.gmra.mrb[44].mxu0 %vm298_vm0, %v2664_v52 }
  0x6b   :  { %2564 = vmatprep.mubr.msk.bf16.mxu0 %vm298_vm0, %v2665_v55 }
  0x72   :  { %2565 = vmatmul.mubr.msk.bf16.gmra.mrb[48].mxu0 %vm298_vm0, %v2666_v61 }
  0x73   :  { %2568 = vmatprep.mubr.msk.bf16.mxu0 %vm298_vm0, %v2667_v63 }
  0x7a   :  { %2569 = vmatmul.mubr.msk.bf16.gmra.mrb[52].mxu0 %vm298_vm0, %v2668_v0 }
  0x7b   :  { %2572 = vmatprep.mubr.msk.bf16.mxu0 %vm298_vm0, %v2677_v1 }
  0x82   :  { %2573 = vmatmul.mubr.msk.bf16.gmra.mrb[56].mxu0 %vm298_vm0, %v2678_v2 }
  0x83   :  { %2576 = vmatprep.mubr.msk.bf16.mxu0 %vm298_vm0, %v2687_v3 }
  0x8a   :  { %2577 = vmatmul.mubr.msk.bf16.gmra.mrb[60].mxu0 %vm298_vm0, %v2688_v4  ;;  %v2727_v4 = vld [vmem:[%s3628_s3 + $0x220] sm:$0xff]  }
  0xe5   :  { %v2518_v24 = vpop.f32.mrb[0].mxu0 }
  0xe6   :  { %v438_v25 = vadd.f32 %v2518_v24, %v3104_v23  ;;  %v429_v26 = vpop.f32.mrb[1].mxu0 }
  0xe7   :  { %v430_v27 = vadd.f32 %v3104_v23, %v429_v26  ;;  %v2519_v28 = vpop.f32.mrb[2].mxu0 }
  0xe8   :  { %v686_v29 = vmax.f32 %v438_v25, 0.0  ;;  %v441_v30 = vadd.f32 %v2519_v28, %v3104_v23  ;;  %v432_v31 = vpop.f32.mrb[3].mxu0 }
  0xe9   :  { %v684_v32 = vmax.f32 %v430_v27, 0.0  ;;  %v3110_v33 = vadd.f32 %v3104_v23, %v432_v31  ;;  %v2732_v31 = vld [vmem:[%s3628_s3 + $0x238] sm:$0xff]  }
  0xea   :  { %v687_v34 = vmax.f32 %v441_v30, 0.0 }
  0xeb   :  { %v750_v35 = vpack.c.bf16 %v686_v29, %v684_v32  ;;  %v685_v36 = vmax.f32 %v3110_v33, 0.0 }
  0xed   :  { %v751_v37 = vpack.c.bf16 %v687_v34, %v685_v36  ;;  %v2522_v38 = vpop.f32.mrb[4].mxu0 }
  0xee   :  { %v454_v39 = vadd.f32 %v2522_v38, %v3104_v23  ;;  %v445_v40 = vpop.f32.mrb[5].mxu0 }
  0xef   :  { %v446_v42 = vadd.f32 %v3104_v23, %v445_v40  ;;  %v2523_v43 = vpop.f32.mrb[6].mxu0  ;;  %1606 = vmatprep.mubr.bf16.mxu0 %v751_v37 }
  0xf0   :  { %v690_v44 = vmax.f32 %v454_v39, 0.0  ;;  %v457_v45 = vadd.f32 %v2523_v43, %v3104_v23  ;;  %v448_v46 = vpop.f32.mrb[7].mxu0  ;;  %1607 = vmatmul.mubr.bf16.vlgmr.msra.gmra.mrb[64].mxu0 %v750_v35 }
  0xf1   :  { %v688_v47 = vmax.f32 %v446_v42, 0.0  ;;  %v449_v48 = vadd.f32 %v3104_v23, %v448_v46  ;;  %2581 = vmatpush3.bf16.msra.mxu0 %v2719_v17 }
  0xf2   :  { %v691_v49 = vmax.f32 %v457_v45, 0.0  ;;  %2582 = vmatprep.subr.bf16.mxu0 %v2720_v41 }
  0xf3   :  { %v756_v51 = vpack.c.bf16 %v690_v44, %v688_v47  ;;  %v689_v52 = vmax.f32 %v449_v48, 0.0 }
  0xf5   :  { %v3125_v53 = vpack.c.bf16 %v689_v52, %v687_v34  ;;  %v757_v54 = vpack.c.bf16 %v691_v49, %v689_v52  ;;  %v2526_v55 = vpop.f32.mrb[8].mxu0  ;;  %2583 = vmatpush3.bf16.msra.mxu0 %v2720_v41 }
  0xf6   :  { %v470_v56 = vadd.f32 %v2526_v55, %v3104_v23  ;;  %v461_v57 = vpop.f32.mrb[9].mxu0  ;;  %2584 = vmatprep.subr.bf16.mxu0 %v2723_v50 }
  0xf7   :  { %v462_v59 = vadd.f32 %v3104_v23, %v461_v57  ;;  %v2527_v60 = vpop.f32.mrb[10].mxu0  ;;  %1614 = vmatprep.mubr.bf16.mxu0 %v757_v54 }
  0xf8   :  { %v694_v61 = vmax.f32 %v470_v56, 0.0  ;;  %v473_v63 = vadd.f32 %v2527_v60, %v3104_v23  ;;  %v464_v0 = vpop.f32.mrb[11].mxu0  ;;  %1615 = vmatmul.mubr.bf16.gmra.mrb[68].mxu0 %v756_v51 }
  0xf9   :  { %v692_v1 = vmax.f32 %v462_v59, 0.0  ;;  %v465_v2 = vadd.f32 %v3104_v23, %v464_v0  ;;  %2585 = vmatpush3.bf16.msra.mxu0 %v2723_v50 }
  0xfa   :  { %v695_v3 = vmax.f32 %v473_v63, 0.0  ;;  %2586 = vmatprep.subr.bf16.mxu0 %v2724_v58 }
  0xfb   :  { %v3137_v5 = vpack.c.bf16 %v694_v61, %v692_v1  ;;  %v693_v6 = vmax.f32 %v465_v2, 0.0 }
  0xfd   :  { %v3140_v8 = vpack.c.bf16 %v693_v6, %v2754_v7  ;;  %v3142_v9 = vpack.c.bf16 %v695_v3, %v693_v6  ;;  %v2530_v10 = vpop.f32.mrb[12].mxu0  ;;  %1428 = vmatprep.mubr.bf16.mxu1 %v3137_v5  ;;  %2587 = vmatpush3.bf16.msra.mxu0 %v2724_v58 }
  0xfe   :  { %v486_v11 = vadd.f32 %v2530_v10, %v3104_v23  ;;  %v477_v12 = vpop.f32.mrb[13].mxu0  ;;  %2588 = vmatprep.subr.bf16.mxu0 %v2727_v4 }
  0xff   :  { %v478_v14 = vadd.f32 %v3104_v23, %v477_v12  ;;  %v2531_v15 = vpop.f32.mrb[14].mxu0  ;;  %1429 = vmatmul.mubr.bf16.gmra.mrb[8].mxu1 %v3140_v8 }
 0x100   :  { %v698_v16 = vmax.f32 %v486_v11, 0.0  ;;  %v489_v17 = vadd.f32 %v2531_v15, %v3104_v23  ;;  %v480_v18 = vpop.f32.mrb[15].mxu0 }
 0x101   :  { %v696_v19 = vmax.f32 %v478_v14, 0.0  ;;  %v481_v20 = vadd.f32 %v3104_v23, %v480_v18  ;;  %2589 = vmatpush3.bf16.msra.mxu0 %v2727_v4 }
 0x102   :  { %v699_v21 = vmax.f32 %v489_v17, 0.0  ;;  %2590 = vmatprep.subr.bf16.mxu0 %v2728_v13 }
 0x103   :  { %v3156_v24 = vpack.c.bf16 %v698_v16, %v696_v19  ;;  %v697_v25 = vmax.f32 %v481_v20, 0.0 }
 0x105   :  { %v3158_v26 = vpack.c.bf16 %v697_v25, %v695_v3  ;;  %v3160_v27 = vpack.c.bf16 %v699_v21, %v697_v25  ;;  %v2534_v28 = vpop.f32.mrb[16].mxu0  ;;  %1436 = vmatprep.mubr.bf16.mxu1 %v3156_v24  ;;  %2591 = vmatpush3.bf16.msra.mxu0 %v2728_v13 }
 0x106   :  { %v502_v29 = vadd.f32 %v2534_v28, %v3104_v23  ;;  %v493_v30 = vpop.f32.mrb[17].mxu0  ;;  %2592 = vmatprep.subr.bf16.mxu0 %v2731_v22 }
 0x107   :  { %v494_v32 = vadd.f32 %v3104_v23, %v493_v30  ;;  %v2535_v34 = vpop.f32.mrb[18].mxu0  ;;  %1437 = vmatmul.mubr.bf16.gmra.mrb[12].mxu1 %v3158_v26 }
 0x108   :  { %v702_v35 = vmax.f32 %v502_v29, 0.0  ;;  %v505_v37 = vadd.f32 %v2535_v34, %v3104_v23  ;;  %v496_v38 = vpop.f32.mrb[19].mxu0 }
 0x109   :  { %v700_v39 = vmax.f32 %v494_v32, 0.0  ;;  %v3171_v40 = vadd.f32 %v3104_v23, %v496_v38  ;;  %2593 = vmatpush3.bf16.msra.mxu0 %v2731_v22 }
 0x10a   :  { %v703_v41 = vmax.f32 %v505_v37, 0.0  ;;  %2594 = vmatprep.subr.bf16.mxu0 %v2732_v31 }
 0x10b   :  { %v762_v42 = vpack.c.bf16 %v702_v35, %v700_v39  ;;  %v701_v43 = vmax.f32 %v3171_v40, 0.0 }
 0x10d   :  { %v763_v44 = vpack.c.bf16 %v703_v41, %v701_v43  ;;  %v2538_v45 = vpop.f32.mrb[20].mxu0  ;;  %2595 = vmatpush3.bf16.msra.mxu0 %v2732_v31 }
 0x10e   :  { %v518_v46 = vadd.f32 %v2538_v45, %v3104_v23  ;;  %v509_v47 = vpop.f32.mrb[21].mxu0 }
 0x10f   :  { %v510_v48 = vadd.f32 %v3104_v23, %v509_v47  ;;  %v2539_v49 = vpop.f32.mrb[22].mxu0  ;;  %1622 = vmatprep.mubr.bf16.mxu0 %v763_v44 }
 0x110   :  { %v706_v50 = vmax.f32 %v518_v46, 0.0  ;;  %v521_v51 = vadd.f32 %v2539_v49, %v3104_v23  ;;  %v512_v52 = vpop.f32.mrb[23].mxu0  ;;  %1623 = vmatmul.mubr.bf16.gmra.mrb[72].mxu0 %v762_v42 }
 0x111   :  { %v704_v54 = vmax.f32 %v510_v48, 0.0  ;;  %v513_v55 = vadd.f32 %v3104_v23, %v512_v52 }
 0x112   :  { %v707_v56 = vmax.f32 %v521_v51, 0.0 }
 0x113   :  { %v768_v57 = vpack.c.bf16 %v706_v50, %v704_v54  ;;  %v705_v58 = vmax.f32 %v513_v55, 0.0 }
 0x115   :  { %v3180_v59 = vpack.c.bf16 %v705_v58, %v703_v41  ;;  %v769_v60 = vpack.c.bf16 %v707_v56, %v705_v58  ;;  %v2542_v61 = vpop.f32.mrb[24].mxu0 }
 0x116   :  { %v534_v63 = vadd.f32 %v2542_v61, %v3104_v23  ;;  %v525_v0 = vpop.f32.mrb[25].mxu0 }
 0x117   :  { %v526_v1 = vadd.f32 %v3104_v23, %v525_v0  ;;  %v2543_v2 = vpop.f32.mrb[26].mxu0  ;;  %1630 = vmatprep.mubr.bf16.mxu0 %v769_v60 }
 0x118   :  { %v710_v3 = vmax.f32 %v534_v63, 0.0  ;;  %v537_v4 = vadd.f32 %v2543_v2, %v3104_v23  ;;  %v528_v6 = vpop.f32.mrb[27].mxu0  ;;  %1631 = vmatmul.mubr.bf16.gmra.mrb[76].mxu0 %v768_v57 }
 0x119   :  { %v708_v10 = vmax.f32 %v526_v1, 0.0  ;;  %v529_v11 = vadd.f32 %v3104_v23, %v528_v6 }
 0x11a   :  { %v711_v12 = vmax.f32 %v537_v4, 0.0 }
 0x11b   :  { %v3186_v13 = vpack.c.bf16 %v710_v3, %v708_v10  ;;  %v709_v14 = vmax.f32 %v529_v11, 0.0 }
 0x11d   :  { %v3189_v15 = vpack.c.bf16 %v709_v14, %v2754_v7  ;;  %v3191_v16 = vpack.c.bf16 %v711_v12, %v709_v14  ;;  %v2546_v17 = vpop.f32.mrb[28].mxu0  ;;  %1444 = vmatprep.mubr.bf16.mxu1 %v3186_v13 }
 0x11e   :  { %v550_v18 = vadd.f32 %v2546_v17, %v3104_v23  ;;  %v541_v19 = vpop.f32.mrb[29].mxu0 }
 0x11f   :  { %v542_v20 = vadd.f32 %v3104_v23, %v541_v19  ;;  %v2547_v21 = vpop.f32.mrb[30].mxu0  ;;  %1445 = vmatmul.mubr.bf16.gmra.mrb[16].mxu1 %v3189_v15 }
 0x120   :  { %v714_v22 = vmax.f32 %v550_v18, 0.0  ;;  %v553_v25 = vadd.f32 %v2547_v21, %v3104_v23  ;;  %v544_v28 = vpop.f32.mrb[31].mxu0 }
 0x121   :  { %v712_v29 = vmax.f32 %v542_v20, 0.0  ;;  %v545_v30 = vadd.f32 %v3104_v23, %v544_v28 }
 0x122   :  { %v715_v31 = vmax.f32 %v553_v25, 0.0 }
 0x123   :  { %v3199_v32 = vpack.c.bf16 %v714_v22, %v712_v29  ;;  %v713_v34 = vmax.f32 %v545_v30, 0.0 }
 0x125   :  { %v3201_v35 = vpack.c.bf16 %v713_v34, %v711_v12  ;;  %v3203_v37 = vpack.c.bf16 %v715_v31, %v713_v34  ;;  %v2550_v38 = vpop.f32.mrb[32].mxu0  ;;  %1452 = vmatprep.mubr.bf16.mxu1 %v3199_v32 }
 0x126   :  { %v566_v39 = vadd.f32 %v2550_v38, %v3104_v23  ;;  %v557_v41 = vpop.f32.mrb[33].mxu0 }
 0x127   :  { %v558_v42 = vadd.f32 %v3104_v23, %v557_v41  ;;  %v2551_v44 = vpop.f32.mrb[34].mxu0  ;;  %1453 = vmatmul.mubr.bf16.gmra.mrb[20].mxu1 %v3201_v35 }
 0x128   :  { %v718_v45 = vmax.f32 %v566_v39, 0.0  ;;  %v569_v46 = vadd.f32 %v2551_v44, %v3104_v23  ;;  %v560_v47 = vpop.f32.mrb[35].mxu0 }
 0x129   :  { %v716_v48 = vmax.f32 %v558_v42, 0.0  ;;  %v3211_v49 = vadd.f32 %v3104_v23, %v560_v47 }
 0x12a   :  { %v719_v50 = vmax.f32 %v569_v46, 0.0 }
 0x12b   :  { %v774_v51 = vpack.c.bf16 %v718_v45, %v716_v48  ;;  %v717_v52 = vmax.f32 %v3211_v49, 0.0 }
 0x12d   :  { %v775_v54 = vpack.c.bf16 %v719_v50, %v717_v52  ;;  %v2554_v55 = vpop.f32.mrb[36].mxu0 }
 0x12e   :  { %v582_v56 = vadd.f32 %v2554_v55, %v3104_v23  ;;  %v573_v57 = vpop.f32.mrb[37].mxu0 }
 0x12f   :  { %v574_v58 = vadd.f32 %v3104_v23, %v573_v57  ;;  %v2555_v60 = vpop.f32.mrb[38].mxu0  ;;  %1638 = vmatprep.mubr.bf16.mxu0 %v775_v54 }
 0x130   :  { %v722_v61 = vmax.f32 %v582_v56, 0.0  ;;  %v585_v63 = vadd.f32 %v2555_v60, %v3104_v23  ;;  %v576_v0 = vpop.f32.mrb[39].mxu0  ;;  %1639 = vmatmul.mubr.bf16.gmra.mrb[80].mxu0 %v774_v51 }
 0x131   :  { %v720_v1 = vmax.f32 %v574_v58, 0.0  ;;  %v577_v2 = vadd.f32 %v3104_v23, %v576_v0 }
 0x132   :  { %v723_v3 = vmax.f32 %v585_v63, 0.0 }
 0x133   :  { %v780_v4 = vpack.c.bf16 %v722_v61, %v720_v1  ;;  %v721_v6 = vmax.f32 %v577_v2, 0.0  ;;  %v749_v61 = vpack.c.bf16 %v685_v36, %v2754_v7 }
 0x135   :  { %v3220_v10 = vpack.c.bf16 %v721_v6, %v719_v50  ;;  %v781_v11 = vpack.c.bf16 %v723_v3, %v721_v6  ;;  %v2558_v12 = vpop.f32.mrb[40].mxu0  ;;  %v2243_v3 = vpop.f32.mrb[0].mxu1 }
 0x136   :  { %v598_v14 = vadd.f32 %v2558_v12, %v3104_v23  ;;  %v589_v17 = vpop.f32.mrb[41].mxu0  ;;  %v2244_v12 = vpop.f32.mrb[1].mxu1 }
 0x137   :  { %v590_v18 = vadd.f32 %v3104_v23, %v589_v17  ;;  %v2559_v19 = vpop.f32.mrb[42].mxu0  ;;  %1646 = vmatprep.mubr.bf16.mxu0 %v781_v11  ;;  %v3256_v33 = vadd.f32 %v2244_v12, %v2243_v3  ;;  %v2735_v12 = vld [vmem:[%s3628_s3 + $0x1d8] sm:$0xff]  }
 0x138   :  { %v726_v20 = vmax.f32 %v598_v14, 0.0  ;;  %v601_v21 = vadd.f32 %v2559_v19, %v3104_v23  ;;  %v592_v22 = vpop.f32.mrb[43].mxu0  ;;  %1647 = vmatmul.mubr.bf16.gmra.mrb[84].mxu0 %v780_v4 }
 0x139   :  { %v724_v25 = vmax.f32 %v590_v18, 0.0  ;;  %v593_v28 = vadd.f32 %v3104_v23, %v592_v22 }
 0x13a   :  { %v727_v29 = vmax.f32 %v601_v21, 0.0  ;;  %v2726_v21 = vld [vmem:[%s3628_s3 + $0x180] sm:$0xff]  }
 0x13b   :  { %v3226_v30 = vpack.c.bf16 %v726_v20, %v724_v25  ;;  %v725_v31 = vmax.f32 %v593_v28, 0.0  ;;  %v2246_v20 = vpop.f32.mrb[2].mxu1  ;;  %v2729_v28 = vld [vmem:[%s3628_s3 + $0x1c8] sm:$0xff]  }
 0x13d   :  { %v3229_v34 = vpack.c.bf16 %v725_v31, %v2754_v7  ;;  %v3231_v38 = vpack.c.bf16 %v727_v29, %v725_v31  ;;  %v2562_v39 = vpop.f32.mrb[44].mxu0  ;;  %1460 = vmatprep.mubr.bf16.mxu1 %v3226_v30 }
 0x13e   :  { %v614_v41 = vadd.f32 %v2562_v39, %v3104_v23  ;;  %v605_v42 = vpop.f32.mrb[45].mxu0 }
 0x13f   :  { %v606_v44 = vadd.f32 %v3104_v23, %v605_v42  ;;  %v2563_v45 = vpop.f32.mrb[46].mxu0  ;;  %1461 = vmatmul.mubr.bf16.gmra.mrb[24].mxu1 %v3229_v34 }
 0x140   :  { %v730_v46 = vmax.f32 %v614_v41, 0.0  ;;  %v617_v47 = vadd.f32 %v2563_v45, %v3104_v23  ;;  %v608_v48 = vpop.f32.mrb[47].mxu0 }
 0x141   :  { %v728_v50 = vmax.f32 %v606_v44, 0.0  ;;  %v609_v51 = vadd.f32 %v3104_v23, %v608_v48 }
 0x142   :  { %v731_v54 = vmax.f32 %v617_v47, 0.0 }
 0x143   :  { %v3239_v55 = vpack.c.bf16 %v730_v46, %v728_v50  ;;  %v729_v56 = vmax.f32 %v609_v51, 0.0  ;;  %v2730_v51 = vld [vmem:[%s3628_s3 + $0x188] sm:$0xff]  }
 0x145   :  { %v3241_v57 = vpack.c.bf16 %v729_v56, %v727_v29  ;;  %v3243_v58 = vpack.c.bf16 %v731_v54, %v729_v56  ;;  %v2566_v60 = vpop.f32.mrb[48].mxu0  ;;  %1468 = vmatprep.mubr.bf16.mxu1 %v3239_v55  ;;  %v2247_v29 = vpop.f32.mrb[3].mxu1 }
 0x146   :  { %v630_v63 = vadd.f32 %v2566_v60, %v3104_v23  ;;  %v621_v0 = vpop.f32.mrb[49].mxu0  ;;  %v3268_v41 = vadd.f32 %v2247_v29, %v2246_v20  ;;  %v2249_v42 = vpop.f32.mrb[4].mxu1 }
 0x147   :  { %v622_v1 = vadd.f32 %v3104_v23, %v621_v0  ;;  %v2567_v2 = vpop.f32.mrb[50].mxu0  ;;  %1469 = vmatmul.mubr.bf16.gmra.mrb[28].mxu1 %v3241_v57  ;;  %v2250_v46 = vpop.f32.mrb[5].mxu1 }
 0x148   :  { %v734_v4 = vmax.f32 %v630_v63, 0.0  ;;  %v633_v6 = vadd.f32 %v2567_v2, %v3104_v23  ;;  %v624_v11 = vpop.f32.mrb[51].mxu0  ;;  %1509 = vmatprep.mubr.bf16.mxu1 %v749_v61  ;;  %v3277_v54 = vadd.f32 %v2250_v46, %v2249_v42  ;;  %v2252_v56 = vpop.f32.mrb[6].mxu1  ;;  %v2733_v63 = vld [vmem:[%s3628_s3 + $0x1d0] sm:$0xff]   ;;  %v2739_v46 = vld [vmem:[%s3628_s3 + $0x1e8] sm:$0xff]  }
 0x149   :  { %v732_v14 = vmax.f32 %v622_v1, 0.0  ;;  %v3254_v17 = vadd.f32 %v3104_v23, %v624_v11  ;;  %v2253_v0 = vpop.f32.mrb[7].mxu1 }
 0x14a   :  { %v735_v36 = vmax.f32 %v633_v6, 0.0  ;;  %v3283_v2 = vadd.f32 %v2253_v0, %v2252_v56 }
 0x14b   :  { %v786_v18 = vpack.c.bf16 %v734_v4, %v732_v14  ;;  %v733_v19 = vmax.f32 %v3254_v17, 0.0  ;;  %v2734_v4 = vld [vmem:[%s3628_s3 + $0x190] sm:$0xff]  }
 0x14d   :  { %v787_v22 = vpack.c.bf16 %v735_v36, %v733_v19  ;;  %v2570_v25 = vpop.f32.mrb[52].mxu0 }
 0x14e   :  { %v646_v31 = vadd.f32 %v2570_v25, %v3104_v23  ;;  %v637_v39 = vpop.f32.mrb[53].mxu0  ;;  %v2736_v25 = vld [vmem:[%s3628_s3 + $0x198] sm:$0xff]  }
 0x14f   :  { %v638_v44 = vadd.f32 %v3104_v23, %v637_v39  ;;  %v2571_v45 = vpop.f32.mrb[54].mxu0  ;;  %1510 = vmatmul.mubr.bf16.vlgmr.msra.gmra.mrb[32].mxu1 %v2753_v62  ;;  %1654 = vmatprep.mubr.bf16.mxu0 %v787_v22 }
 0x150   :  { %v738_v47 = vmax.f32 %v646_v31, 0.0  ;;  %v649_v48 = vadd.f32 %v2571_v45, %v3104_v23  ;;  %2420 = vmatpush3.bf16.msra.mxu1 %v2726_v21  ;;  %v640_v50 = vpop.f32.mrb[55].mxu0  ;;  %1517 = vmatprep.mubr.bf16.mxu1 %v3125_v53  ;;  %v2738_v45 = vld [vmem:[%s3628_s3 + $0x1a0] sm:$0xff]  }
 0x151   :  { %v736_v60 = vmax.f32 %v638_v44, 0.0  ;;  %v641_v61 = vadd.f32 %v3104_v23, %v640_v50  ;;  %1655 = vmatmul.mubr.bf16.gmra.mrb[88].mxu0 %v786_v18  ;;  %2421 = vmatprep.subr.bf16.mxu1 %v2729_v28  ;;  %v761_v18 = vpack.c.bf16 %v701_v43, %v2754_v7 }
 0x152   :  { %v739_v1 = vmax.f32 %v649_v48, 0.0 }
 0x153   :  { %v792_v53 = vpack.c.bf16 %v738_v47, %v736_v60  ;;  %v737_v3 = vmax.f32 %v641_v61, 0.0  ;;  %v2740_v61 = vld [vmem:[%s3628_s3 + $0x1a8] sm:$0xff]  }
 0x154   :  { %2422 = vmatpush3.bf16.msra.mxu1 %v2730_v51 }
 0x155   :  { %v3288_v6 = vpack.c.bf16 %v737_v3, %v735_v36  ;;  %v793_v11 = vpack.c.bf16 %v739_v1, %v737_v3  ;;  %2423 = vmatprep.subr.bf16.mxu1 %v2733_v63  ;;  %v2574_v14 = vpop.f32.mrb[56].mxu0 }
 0x156   :  { %v662_v20 = vadd.f32 %v2574_v14, %v3104_v23  ;;  %v653_v21 = vpop.f32.mrb[57].mxu0  ;;  %v2743_v14 = vld [vmem:[%s3628_s3 + $0x1f8] sm:$0xff]  }
 0x157   :  { %1518 = vmatmul.mubr.bf16.gmra.mrb[36].mxu1 %v2753_v62  ;;  %1662 = vmatprep.mubr.bf16.mxu0 %v793_v11  ;;  %v654_v36 = vadd.f32 %v3104_v23, %v653_v21  ;;  %v2575_v22 = vpop.f32.mrb[58].mxu0  ;;  %v2737_v62 = vld [vmem:[%s3628_s3 + $0x1e0] sm:$0xff]   ;;  %v2744_v21 = vld [vmem:[%s3628_s3 + $0x1b8] sm:$0xff]  }
 0x158   :  { %1525 = vmatprep.mubr.bf16.mxu1 %v761_v18  ;;  %2424 = vmatpush3.bf16.msra.mxu1 %v2734_v4  ;;  %v742_v28 = vmax.f32 %v662_v20, 0.0  ;;  %v665_v29 = vadd.f32 %v2575_v22, %v3104_v23  ;;  %v656_v40 = vpop.f32.mrb[59].mxu0 }
 0x159   :  { %1663 = vmatmul.mubr.bf16.gmra.mrb[92].mxu0 %v792_v53  ;;  %2425 = vmatprep.subr.bf16.mxu1 %v2735_v12  ;;  %v740_v43 = vmax.f32 %v654_v36, 0.0  ;;  %v3307_v31 = vadd.f32 %v3104_v23, %v656_v40  ;;  %v2742_v12 = vld [vmem:[%s3628_s3 + $0x1b0] sm:$0xff]  }
 0x15a   :  { %2596 = vmatprep.mubr.bf16.mxu0 %v3142_v9  ;;  %v743_v39 = vmax.f32 %v665_v29, 0.0 }
 0x15b   :  { %v3310_v42 = vpack.c.bf16 %v742_v28, %v740_v43  ;;  %v741_v44 = vmax.f32 %v3307_v31, 0.0 }
 0x15c   :  { %2426 = vmatpush3.bf16.msra.mxu1 %v2736_v25 }
 0x15d   :  { %2427 = vmatprep.subr.bf16.mxu1 %v2737_v62  ;;  %v790_v47 = vpack.c.bf16 %v743_v39, %v741_v44  ;;  %v2578_v48 = vpop.f32.mrb[60].mxu0 }
 0x15e   :  { %v678_v50 = vadd.f32 %v2578_v48, %v3104_v23  ;;  %v669_v51 = vpop.f32.mrb[61].mxu0 }
 0x15f   :  { %1526 = vmatmul.mubr.bf16.gmra.mrb[40].mxu1 %v3142_v9  ;;  %v670_v56 = vadd.f32 %v3104_v23, %v669_v51  ;;  %v2579_v60 = vpop.f32.mrb[62].mxu0  ;;  %v2741_v9 = vld [vmem:[%s3628_s3 + $0x1f0] sm:$0xff]  }
 0x160   :  { %1533 = vmatprep.mubr.bf16.mxu1 %v3180_v59  ;;  %2428 = vmatpush3.bf16.msra.mxu1 %v2738_v45  ;;  %v746_v63 = vmax.f32 %v678_v50, 0.0  ;;  %v681_v0 = vadd.f32 %v2579_v60, %v3104_v23  ;;  %v672_v1 = vpop.f32.mrb[63].mxu0 }
 0x161   :  { %2597 = vmatmul.mubr.bf16.vlgmr.msra.gmra.mrb[96].mxu0 %v3160_v27  ;;  %2429 = vmatprep.subr.bf16.mxu1 %v2739_v46  ;;  %v744_v53 = vmax.f32 %v670_v56, 0.0  ;;  %v673_v3 = vadd.f32 %v3104_v23, %v672_v1  ;;  %v773_v23 = vpack.c.bf16 %v717_v52, %v2754_v7 }
 0x162   :  { %2600 = vmatprep.mubr.bf16.mxu0 %v3191_v16  ;;  %v747_v59 = vmax.f32 %v681_v0, 0.0 }
 0x163   :  { %v795_v4 = vpack.c.bf16 %v746_v63, %v744_v53  ;;  %v745_v11 = vmax.f32 %v673_v3, 0.0  ;;  %v2746_v3 = vld [vmem:[%s3630_s5 + $0x8] sm:$0xff]  }
 0x164   :  { %2430 = vmatpush3.bf16.msra.mxu1 %v2740_v61  ;;  %v2745_v61 = vld [vmem:[%s3630_s5] sm:$0xff]  }
 0x165   :  { %2431 = vmatprep.subr.bf16.mxu1 %v2741_v9  ;;  %v794_v18 = vpack.c.bf16 %v745_v11, %v743_v39  ;;  %v796_v20 = vpack.c.bf16 %v747_v59, %v745_v11 }
 0x167   :  { %1534 = vmatmul.mubr.bf16.gmra.mrb[44].mxu1 %v3160_v27  ;;  %v785_v27 = vpack.c.bf16 %v733_v19, %v2754_v7 }
 0x168   :  { %1541 = vmatprep.mubr.bf16.mxu1 %v773_v23  ;;  %2432 = vmatpush3.bf16.msra.mxu1 %v2742_v12 }
 0x169   :  { %2601 = vmatmul.mubr.bf16.gmra.mrb[100].mxu0 %v3203_v37  ;;  %2433 = vmatprep.subr.bf16.mxu1 %v2743_v14  ;;  %v2747_v14 = vld [vmem:[%s3630_s5 + $0x10] sm:$0xff]  }
 0x16a   :  { %2604 = vmatprep.mubr.bf16.mxu0 %v3231_v38 }
 0x16c   :  { %2434 = vmatpush3.bf16.msra.mxu1 %v2744_v21 }
 0x16d   :  { %2612 = vmatprep.subr.bf16.mxu1 %v2754_v7 }
 0x16f   :  { %1542 = vmatmul.mubr.bf16.gmra.mrb[48].mxu1 %v3191_v16 }
 0x170   :  { %1549 = vmatprep.mubr.bf16.mxu1 %v3220_v10 }
 0x171   :  { %2605 = vmatmul.mubr.bf16.gmra.mrb[104].mxu0 %v3243_v58 }
 0x172   :  { %2608 = vmatprep.mubr.bf16.mxu0 %v790_v47 }
 0x177   :  { %1550 = vmatmul.mubr.bf16.gmra.mrb[52].mxu1 %v3203_v37 }
 0x178   :  { %1557 = vmatprep.mubr.bf16.mxu1 %v785_v27 }
 0x179   :  { %2609 = vmatmul.mubr.bf16.gmra.mrb[108].mxu0 %v796_v20 }
 0x17f   :  { %1558 = vmatmul.mubr.bf16.gmra.mrb[56].mxu1 %v3231_v38 }
 0x180   :  { %1565 = vmatprep.mubr.bf16.mxu1 %v3288_v6 }
 0x187   :  { %1566 = vmatmul.mubr.bf16.gmra.mrb[60].mxu1 %v3243_v58 }
 0x188   :  { %1703 = vmatprep.mubr.bf16.mxu1 %v3137_v5  ;;  %v788_v5 = vpack.c.bf16 %v741_v44, %v2754_v7 }
 0x18f   :  { %1704 = vmatmul.mubr.bf16.vlgmr.msra.gmra.mrb[64].mxu1 %v3140_v8 }
 0x190   :  { %1711 = vmatprep.mubr.bf16.mxu1 %v3156_v24  ;;  %2613 = vmatpush3.bf16.msra.mxu1 %v2745_v61 }
 0x191   :  { %2614 = vmatprep.subr.bf16.mxu1 %v2754_v7 }
 0x194   :  { %2615 = vmatpush3.bf16.msra.mxu1 %v2746_v3 }
 0x195   :  { %2616 = vmatprep.subr.bf16.mxu1 %v2754_v7 }
 0x197   :  { %1712 = vmatmul.mubr.bf16.gmra.mrb[68].mxu1 %v3158_v26 }
 0x198   :  { %1719 = vmatprep.mubr.bf16.mxu1 %v3186_v13  ;;  %2617 = vmatpush3.bf16.msra.mxu1 %v2747_v14 }
 0x199   :  { %2618 = vmatprep.subr.bf16.mxu1 %v2754_v7 }
 0x19f   :  { %1720 = vmatmul.mubr.bf16.gmra.mrb[72].mxu1 %v3189_v15 }
 0x1a0   :  { %1727 = vmatprep.mubr.bf16.mxu1 %v3199_v32 }
 0x1a7   :  { %1728 = vmatmul.mubr.bf16.gmra.mrb[76].mxu1 %v3201_v35 }
 0x1a8   :  { %1735 = vmatprep.mubr.bf16.mxu1 %v3226_v30 }
 0x1af   :  { %1736 = vmatmul.mubr.bf16.gmra.mrb[80].mxu1 %v3229_v34 }
 0x1b0   :  { %1743 = vmatprep.mubr.bf16.mxu1 %v3239_v55 }
 0x1b7   :  { %1744 = vmatmul.mubr.bf16.gmra.mrb[84].mxu1 %v3241_v57 }
 0x1b8   :  { %1751 = vmatprep.mubr.bf16.mxu1 %v3310_v42 }
 0x1bf   :  { %1752 = vmatmul.mubr.bf16.gmra.mrb[88].mxu1 %v788_v5 }
 0x1c0   :  { %1759 = vmatprep.mubr.bf16.mxu1 %v795_v4 }
 0x1c3   :  { %v2371_v8 = vpop.f32.mrb[64].mxu0 }
 0x1c4   :  { %v2372_v24 = vpop.f32.mrb[65].mxu0 }
 0x1c5   :  { %v3377_v26 = vadd.f32 %v2372_v24, %v2371_v8  ;;  %v2374_v13 = vpop.f32.mrb[66].mxu0  ;;  %v2748_v8 = vld [vmem:[%s3630_s5 + $0x18] sm:$0xff]  }
 0x1c6   :  { %v2375_v15 = vpop.f32.mrb[67].mxu0  ;;  %2619 = vmatpush3.bf16.msra.mxu1 %v2748_v8 }
 0x1c7   :  { %v3379_v16 = vadd.f32 %v2375_v15, %v2374_v13  ;;  %1760 = vmatmul.mubr.bf16.gmra.mrb[92].mxu1 %v794_v18  ;;  %2620 = vmatprep.subr.bf16.mxu1 %v2754_v7 }
 0x1c8   :  { %2628 = vmatprep.mubr.msk.bf16.mxu1 %vm2755_vm1, %v2754_v7 }
 0x1cb   :  { %v2377_v32 = vpop.f32.mrb[68].mxu0 }
 0x1cc   :  { %v2378_v35 = vpop.f32.mrb[69].mxu0 }
 0x1cd   :  { %v3381_v37 = vadd.f32 %v2378_v35, %v2377_v32  ;;  %v2380_v49 = vpop.f32.mrb[70].mxu0 }
 0x1ce   :  { %v2381_v52 = vpop.f32.mrb[71].mxu0 }
 0x1cf   :  { %v3383_v10 = vadd.f32 %v2381_v52, %v2380_v49  ;;  %v2749_v49 = vld [vmem:[%s3630_s5 + $0x20] sm:$0xff]  }
 0x1d0   :  { %2621 = vmatpush3.bf16.msra.mxu1 %v2749_v49 }
 0x1d1   :  { %2622 = vmatprep.subr.bf16.mxu1 %v2754_v7 }
 0x1d2   :  { %v2255_v30 = vpop.f32.mrb[8].mxu1 }
 0x1d3   :  { %v2256_v34 = vpop.f32.mrb[9].mxu1 }
 0x1d4   :  { %v3385_v38 = vadd.f32 %v2256_v34, %v2255_v30  ;;  %v2258_v55 = vpop.f32.mrb[10].mxu1 }
 0x1d5   :  { %v2259_v57 = vpop.f32.mrb[11].mxu1 }
 0x1d6   :  { %v3387_v58 = vadd.f32 %v2259_v57, %v2258_v55  ;;  %v2750_v55 = vld [vmem:[%s3630_s5 + $0x28] sm:$0xff]  }
 0x1d7   :  { %2623 = vmatpush3.bf16.msra.mxu1 %v2750_v55 }
 0x1d8   :  { %2624 = vmatprep.subr.bf16.mxu1 %v2754_v7 }
 0x1da   :  { %v2261_v17 = vpop.f32.mrb[12].mxu1 }
 0x1db   :  { %v2262_v19 = vpop.f32.mrb[13].mxu1 }
 0x1dc   :  { %v3389_v6 = vadd.f32 %v2262_v19, %v2261_v17  ;;  %v2264_v36 = vpop.f32.mrb[14].mxu1 }
 0x1dd   :  { %v2265_v22 = vpop.f32.mrb[15].mxu1 }
 0x1de   :  { %v3391_v25 = vadd.f32 %v2265_v22, %v2264_v36 }
 0x1e3   :  { %v2383_v28 = vpop.f32.mrb[72].mxu0 }
 0x1e4   :  { %v2384_v29 = vpop.f32.mrb[73].mxu0 }
 0x1e5   :  { %v3393_v40 = vadd.f32 %v2384_v29, %v2383_v28  ;;  %v2386_v62 = vpop.f32.mrb[74].mxu0 }
 0x1e6   :  { %v2387_v43 = vpop.f32.mrb[75].mxu0 }
 0x1e7   :  { %v3395_v31 = vadd.f32 %v2387_v43, %v2386_v62 }
 0x1eb   :  { %v2389_v39 = vpop.f32.mrb[76].mxu0 }
 0x1ec   :  { %v2390_v42 = vpop.f32.mrb[77].mxu0 }
 0x1ed   :  { %v3397_v44 = vadd.f32 %v2390_v42, %v2389_v39  ;;  %v2392_v45 = vpop.f32.mrb[78].mxu0  ;;  %v3452_v39 = vld [vmem:[%s3631_s4] ss:$0 sm:$0xff] }
 0x1ee   :  { %v2393_v46 = vpop.f32.mrb[79].mxu0  ;;  %v1426_v49 = vadd.f32 %v3283_v2, %v3452_v39  ;;  %v1431_v2 = vadd.f32 %v3385_v38, %v3452_v39 }
 0x1ef   :  { %v3399_v47 = vadd.f32 %v2393_v46, %v2392_v45  ;;  %v1415_v45 = vadd.f32 %v3256_v33, %v3452_v39 }
 0x1f2   :  { %v2267_v48 = vpop.f32.mrb[16].mxu1 }
 0x1f3   :  { %v2268_v50 = vpop.f32.mrb[17].mxu1 }
 0x1f4   :  { %v3401_v51 = vadd.f32 %v2268_v50, %v2267_v48  ;;  %v2270_v56 = vpop.f32.mrb[18].mxu1 }
 0x1f5   :  { %v2271_v60 = vpop.f32.mrb[19].mxu1 }
 0x1f6   :  { %v3406_v63 = vadd.f32 %v2271_v60, %v2270_v56  ;;  %v2751_v56 = vld [vmem:[%s3630_s5 + $0x30] sm:$0xff]  }
 0x1f7   :  { %2625 = vmatpush3.bf16.msra.mxu1 %v2751_v56 }
 0x1f8   :  { %2626 = vmatprep.subr.bf16.mxu1 %v2754_v7 }
 0x1fa   :  { %v2273_v0 = vpop.f32.mrb[20].mxu1 }
 0x1fb   :  { %v2274_v1 = vpop.f32.mrb[21].mxu1 }
 0x1fc   :  { %v3409_v9 = vadd.f32 %v2274_v1, %v2273_v0  ;;  %v2276_v53 = vpop.f32.mrb[22].mxu1  ;;  %v1418_v0 = vadd.f32 %v3268_v41, %v3452_v39 }
 0x1fd   :  { %v2277_v59 = vpop.f32.mrb[23].mxu1 }
 0x1fe   :  { %v3414_v4 = vadd.f32 %v2277_v59, %v2276_v53 }
 0x203   :  { %v2395_v11 = vpop.f32.mrb[80].mxu0 }
 0x204   :  { %v2396_v12 = vpop.f32.mrb[81].mxu0 }
 0x205   :  { %v3420_v18 = vadd.f32 %v2396_v12, %v2395_v11  ;;  %v2398_v20 = vpop.f32.mrb[82].mxu0 }
 0x206   :  { %v2399_v23 = vpop.f32.mrb[83].mxu0 }
 0x207   :  { %v3422_v21 = vadd.f32 %v2399_v23, %v2398_v20  ;;  %v2752_v20 = vld [vmem:[%s3630_s5 + $0x38] sm:$0xff]  }
 0x208   :  { %2627 = vmatpush3.bf16.msra.mxu1 %v2752_v20 }
 0x20b   :  { %v2401_v27 = vpop.f32.mrb[84].mxu0 }
 0x20c   :  { %v2402_v5 = vpop.f32.mrb[85].mxu0 }
 0x20d   :  { %v3428_v24 = vadd.f32 %v2402_v5, %v2401_v27  ;;  %v2404_v13 = vpop.f32.mrb[86].mxu0  ;;  %v1423_v5 = vadd.f32 %v3277_v54, %v3452_v39 }
 0x20e   :  { %v2405_v15 = vpop.f32.mrb[87].mxu0 }
 0x20f   :  { %v3430_v32 = vadd.f32 %v2405_v15, %v2404_v13 }
 0x212   :  { %v2279_v35 = vpop.f32.mrb[24].mxu1 }
 0x213   :  { %v2280_v52 = vpop.f32.mrb[25].mxu1 }
 0x214   :  { %v3436_v30 = vadd.f32 %v2280_v52, %v2279_v35  ;;  %v2282_v34 = vpop.f32.mrb[26].mxu1 }
 0x215   :  { %v2283_v57 = vpop.f32.mrb[27].mxu1 }
 0x216   :  { %v3442_v17 = vadd.f32 %v2283_v57, %v2282_v34 }
 0x21a   :  { %v2285_v19 = vpop.f32.mrb[28].mxu1 }
 0x21b   :  { %v2286_v36 = vpop.f32.mrb[29].mxu1 }
 0x21c   :  { %v3445_v22 = vadd.f32 %v2286_v36, %v2285_v19  ;;  %v2288_v28 = vpop.f32.mrb[30].mxu1 }
 0x21d   :  { %v2289_v29 = vpop.f32.mrb[31].mxu1 }
 0x21e   :  { %v3447_v62 = vadd.f32 %v2289_v29, %v2288_v28 }
 0x222   :  { %v2307_v43 = vpop.f32.mrb[32].mxu1 }
 0x223   :  { %v2308_v42 = vpop.f32.mrb[33].mxu1 }
 0x224   :  { %v2309_v46 = vadd.f32 %v2308_v42, %v2307_v43  ;;  %v2310_v48 = vpop.f32.mrb[34].mxu1  ;;  %v2407_v50 = vpop.f32.mrb[88].mxu0 }
 0x225   :  { %v2311_v60 = vpop.f32.mrb[35].mxu1  ;;  %v2408_v61 = vpop.f32.mrb[89].mxu0 }
 0x226   :  { %v1512_v1 = vadd.f32 %v2309_v46, %v1415_v45  ;;  %v2312_v53 = vadd.f32 %v2311_v60, %v2310_v48  ;;  %v3461_v3 = vadd.f32 %v2408_v61, %v2407_v50  ;;  %v2410_v59 = vpop.f32.mrb[90].mxu0  ;;  %v1434_v50 = vadd.f32 %v3387_v58, %v3452_v39 }
 0x227   :  { %v2411_v11 = vpop.f32.mrb[91].mxu0 }
 0x228   :  { %v1515_v33 = vadd.f32 %v2312_v53, %v1418_v0  ;;  %v3464_v12 = vadd.f32 %v2411_v11, %v2410_v59  ;;  %v3467_v14 = vadd.f32 %v3377_v26, %v1512_v1  ;;  %v1439_v59 = vadd.f32 %v3389_v6, %v3452_v39 }
 0x22a   :  { %v2313_v41 = vpop.f32.mrb[36].mxu1  ;;  %v3473_v23 = vadd.f32 %v3379_v16, %v1515_v33 }
 0x22b   :  { %v2314_v27 = vpop.f32.mrb[37].mxu1 }
 0x22c   :  { %v2315_v8 = vadd.f32 %v2314_v27, %v2313_v41  ;;  %v2316_v13 = vpop.f32.mrb[38].mxu1  ;;  %v2413_v26 = vpop.f32.mrb[92].mxu0  ;;  %v1442_v27 = vadd.f32 %v3391_v25, %v3452_v39 }
 0x22d   :  { %v2317_v15 = vpop.f32.mrb[39].mxu1  ;;  %v2414_v35 = vpop.f32.mrb[93].mxu0 }
 0x22e   :  { %v1520_v52 = vadd.f32 %v2315_v8, %v1423_v5  ;;  %v2318_v34 = vadd.f32 %v2317_v15, %v2316_v13  ;;  %v3480_v16 = vadd.f32 %v2414_v35, %v2413_v26  ;;  %v2416_v55 = vpop.f32.mrb[94].mxu0 }
 0x22f   :  { %v2417_v57 = vpop.f32.mrb[95].mxu0 }
 0x230   :  { %v1523_v19 = vadd.f32 %v2318_v34, %v1426_v49  ;;  %v3482_v36 = vadd.f32 %v2417_v57, %v2416_v55  ;;  %v3485_v7 = vadd.f32 %v3381_v37, %v1520_v52  ;;  %v1447_v49 = vadd.f32 %v3401_v51, %v3452_v39 }
 0x232   :  { %v2319_v54 = vpop.f32.mrb[40].mxu1  ;;  %v3488_v28 = vadd.f32 %v3383_v10, %v1523_v19  ;;  %v1450_v19 = vadd.f32 %v3406_v63, %v3452_v39 }
 0x233   :  { %v2320_v29 = vpop.f32.mrb[41].mxu1 }
 0x234   :  { %v2321_v43 = vadd.f32 %v2320_v29, %v2319_v54  ;;  %v3492_v42 = vpop.f32.mrb[96].mxu0  ;;  %v2322_v45 = vpop.f32.mrb[42].mxu1 }
 0x235   :  { %v3494_v46 = vpop.f32.mrb[97].mxu0  ;;  %v2323_v48 = vpop.f32.mrb[43].mxu1 }
 0x236   :  { %v1528_v37 = vadd.f32 %v2321_v43, %v1431_v2  ;;  %v2324_v56 = vadd.f32 %v2323_v48, %v2322_v45  ;;  %v3498_v60 = vpop.f32.mrb[98].mxu0 }
 0x237   :  { %v3500_v10 = vpop.f32.mrb[99].mxu0 }
 0x238   :  { %v1531_v61 = vadd.f32 %v2324_v56, %v1434_v50  ;;  %v3503_v0 = vadd.f32 %v3393_v40, %v1528_v37  ;;  %v1455_v50 = vadd.f32 %v3409_v9, %v3452_v39 }
 0x23a   :  { %v2325_v38 = vpop.f32.mrb[44].mxu1  ;;  %v3506_v1 = vadd.f32 %v3395_v31, %v1531_v61 }
 0x23b   :  { %v2326_v53 = vpop.f32.mrb[45].mxu1 }
 0x23c   :  { %v2327_v11 = vadd.f32 %v2326_v53, %v2325_v38  ;;  %v3510_v58 = vpop.f32.mrb[100].mxu0  ;;  %v2328_v33 = vpop.f32.mrb[46].mxu1  ;;  %v1458_v53 = vadd.f32 %v3414_v4, %v3452_v39 }
 0x23d   :  { %v3512_v20 = vpop.f32.mrb[101].mxu0  ;;  %v2329_v41 = vpop.f32.mrb[47].mxu1 }
 0x23e   :  { %v1536_v40 = vadd.f32 %v2327_v11, %v1439_v59  ;;  %v2330_v5 = vadd.f32 %v2329_v41, %v2328_v33  ;;  %v3516_v8 = vpop.f32.mrb[102].mxu0 }
 0x23f   :  { %v3518_v31 = vpop.f32.mrb[103].mxu0 }
 0x240   :  { %v1539_v13 = vadd.f32 %v2330_v5, %v1442_v27  ;;  %v3521_v26 = vadd.f32 %v3397_v44, %v1536_v40  ;;  %v1463_v5 = vadd.f32 %v3436_v30, %v3452_v39  ;;  %v1471_v30 = vadd.f32 %v3445_v22, %v3452_v39 }
 0x242   :  { %v2331_v6 = vpop.f32.mrb[48].mxu1  ;;  %v3524_v15 = vadd.f32 %v3399_v47, %v1539_v13 }
 0x243   :  { %v2332_v35 = vpop.f32.mrb[49].mxu1 }
 0x244   :  { %v2333_v52 = vadd.f32 %v2332_v35, %v2331_v6  ;;  %v3528_v25 = vpop.f32.mrb[104].mxu0  ;;  %v2334_v34 = vpop.f32.mrb[50].mxu1  ;;  %v1466_v35 = vadd.f32 %v3442_v17, %v3452_v39  ;;  %v1474_v17 = vadd.f32 %v3447_v62, %v3452_v39 }
 0x245   :  { %v3530_v55 = vpop.f32.mrb[105].mxu0  ;;  %v2335_v57 = vpop.f32.mrb[51].mxu1 }
 0x246   :  { %v1544_v44 = vadd.f32 %v2333_v52, %v1447_v49  ;;  %v2336_v54 = vadd.f32 %v2335_v57, %v2334_v34  ;;  %v3534_v29 = vpop.f32.mrb[106].mxu0 }
 0x247   :  { %v3536_v47 = vpop.f32.mrb[107].mxu0 }
 0x248   :  { %v1547_v2 = vadd.f32 %v2336_v54, %v1450_v19  ;;  %v3539_v43 = vadd.f32 %v3420_v18, %v1544_v44 }
 0x24a   :  { %v2337_v51 = vpop.f32.mrb[52].mxu1  ;;  %v3542_v45 = vadd.f32 %v3422_v21, %v1547_v2 }
 0x24b   :  { %v2338_v48 = vpop.f32.mrb[53].mxu1 }
 0x24c   :  { %v2339_v37 = vadd.f32 %v2338_v48, %v2337_v51  ;;  %v2340_v63 = vpop.f32.mrb[54].mxu1  ;;  %v3546_v56 = vpop.f32.mrb[108].mxu0 }
 0x24d   :  { %v2341_v61 = vpop.f32.mrb[55].mxu1  ;;  %v3548_v38 = vpop.f32.mrb[109].mxu0 }
 0x24e   :  { %v1552_v18 = vadd.f32 %v2339_v37, %v1455_v50  ;;  %v2342_v59 = vadd.f32 %v2341_v61, %v2340_v63  ;;  %v3552_v11 = vpop.f32.mrb[110].mxu0 }
 0x24f   :  { %v3554_v21 = vpop.f32.mrb[111].mxu0 }
 0x250   :  { %v1555_v33 = vadd.f32 %v2342_v59, %v1458_v53  ;;  %v3557_v41 = vadd.f32 %v3428_v24, %v1552_v18 }
 0x252   :  { %v2343_v9 = vpop.f32.mrb[56].mxu1  ;;  %v3560_v27 = vadd.f32 %v3430_v32, %v1555_v33 }
 0x253   :  { %v2344_v40 = vpop.f32.mrb[57].mxu1 }
 0x254   :  { %v2345_v13 = vadd.f32 %v2344_v40, %v2343_v9  ;;  %v2346_v4 = vpop.f32.mrb[58].mxu1 }
 0x255   :  { %v2347_v6 = vpop.f32.mrb[59].mxu1 }
 0x256   :  { %v1560_v49 = vadd.f32 %v2345_v13, %v1463_v5  ;;  %v2348_v52 = vadd.f32 %v2347_v6, %v2346_v4 }
 0x258   :  { %v1563_v34 = vadd.f32 %v2348_v52, %v1466_v35  ;;  %v3567_v24 = vadd.f32 %v3461_v3, %v1560_v49 }
 0x25a   :  { %v2349_v57 = vpop.f32.mrb[60].mxu1  ;;  %v3570_v32 = vadd.f32 %v3464_v12, %v1563_v34 }
 0x25b   :  { %v2350_v19 = vpop.f32.mrb[61].mxu1 }
 0x25c   :  { %v2351_v44 = vadd.f32 %v2350_v19, %v2349_v57  ;;  %v2352_v54 = vpop.f32.mrb[62].mxu1 }
 0x25d   :  { %v2353_v2 = vpop.f32.mrb[63].mxu1 }
 0x25e   :  { %v1568_v51 = vadd.f32 %v2351_v44, %v1471_v30  ;;  %v2354_v48 = vadd.f32 %v2353_v2, %v2352_v54 }
 0x260   :  { %v1571_v50 = vadd.f32 %v2354_v48, %v1474_v17  ;;  %v3577_v3 = vadd.f32 %v3480_v16, %v1568_v51 }
 0x262   :  { %v2435_v37 = vpop.f32.mrb[64].mxu1  ;;  %v3580_v12 = vadd.f32 %v3482_v36, %v1571_v50 }
 0x263   :  { %v2436_v63 = vpop.f32.mrb[65].mxu1 }
 0x264   :  { %v2437_v61 = vadd.f32 %v2436_v63, %v2435_v37  ;;  %v2438_v53 = vpop.f32.mrb[66].mxu1 }
 0x265   :  { %v2439_v22 = vpop.f32.mrb[67].mxu1 }
 0x266   :  { %v1706_v18 = vadd.f32 %v2437_v61, %v3467_v14  ;;  %v2440_v59 = vadd.f32 %v2439_v22, %v2438_v53 }
 0x268   :  { %v1803_v33 = vadd.f32 %v3494_v46, %v1706_v18  ;;  %v1709_v62 = vadd.f32 %v2440_v59, %v3473_v23 }
 0x26a   :  { %v1806_v39 = vadd.f32 %v3500_v10, %v1709_v62  ;;  %v2441_v9 = vpop.f32.mrb[68].mxu1  ;;  %v1865_v40 = vmax.f32 %v1803_v33, 0.0 }
 0x26b   :  { %v2442_v16 = vpop.f32.mrb[69].mxu1 }
 0x26c   :  { %v1866_v5 = vmax.f32 %v1806_v39, 0.0  ;;  %v2443_v13 = vadd.f32 %v2442_v16, %v2441_v9  ;;  %v2444_v36 = vpop.f32.mrb[70].mxu1 }
 0x26d   :  { %v2445_v4 = vpop.f32.mrb[71].mxu1 }
 0x26e   :  { %v1881_v6 = vadd.f32 %v1866_v5, %v1865_v40  ;;  %v1714_v35 = vadd.f32 %v2443_v13, %v3485_v7  ;;  %v2446_v49 = vadd.f32 %v2445_v4, %v2444_v36 }
 0x270   :  { %v1811_v14 = vadd.f32 %v3492_v42, %v1714_v35  ;;  %v1717_v52 = vadd.f32 %v2446_v49, %v3488_v28 }
 0x272   :  { %v1867_v46 = vmax.f32 %v1811_v14, 0.0  ;;  %v1814_v23 = vadd.f32 %v3498_v60, %v1717_v52  ;;  %v2447_v34 = vpop.f32.mrb[72].mxu1 }
 0x273   :  { %v2448_v10 = vpop.f32.mrb[73].mxu1 }
 0x274   :  { %v1882_v57 = vadd.f32 %v1881_v6, %v1867_v46  ;;  %v1868_v19 = vmax.f32 %v1814_v23, 0.0  ;;  %v2449_v30 = vadd.f32 %v2448_v10, %v2447_v34  ;;  %v2450_v44 = vpop.f32.mrb[74].mxu1 }
 0x275   :  { %v2451_v54 = vpop.f32.mrb[75].mxu1 }
 0x276   :  { %v1883_v2 = vadd.f32 %v1882_v57, %v1868_v19  ;;  %v1722_v17 = vadd.f32 %v2449_v30, %v3503_v0  ;;  %v2452_v51 = vadd.f32 %v2451_v54, %v2450_v44 }
 0x278   :  { %v1819_v7 = vadd.f32 %v3512_v20, %v1722_v17  ;;  %v1725_v42 = vadd.f32 %v2452_v51, %v3506_v1 }
 0x27a   :  { %v1869_v48 = vmax.f32 %v1819_v7, 0.0  ;;  %v1822_v28 = vadd.f32 %v3518_v31, %v1725_v42  ;;  %v2453_v50 = vpop.f32.mrb[76].mxu1 }
 0x27b   :  { %v2454_v60 = vpop.f32.mrb[77].mxu1 }
 0x27c   :  { %v1884_v37 = vadd.f32 %v1883_v2, %v1869_v48  ;;  %v1870_v63 = vmax.f32 %v1822_v28, 0.0  ;;  %v2455_v61 = vadd.f32 %v2454_v60, %v2453_v50  ;;  %v2456_v53 = vpop.f32.mrb[78].mxu1 }
 0x27d   :  { %v2457_v22 = vpop.f32.mrb[79].mxu1 }
 0x27e   :  { %v1885_v18 = vadd.f32 %v1884_v37, %v1870_v63  ;;  %v1730_v59 = vadd.f32 %v2455_v61, %v3521_v26  ;;  %v2458_v33 = vadd.f32 %v2457_v22, %v2456_v53 }
 0x280   :  { %v1827_v0 = vadd.f32 %v3510_v58, %v1730_v59  ;;  %v1733_v20 = vadd.f32 %v2458_v33, %v3524_v15 }
 0x282   :  { %v1871_v62 = vmax.f32 %v1827_v0, 0.0  ;;  %v1830_v1 = vadd.f32 %v3516_v8, %v1733_v20  ;;  %v2459_v39 = vpop.f32.mrb[80].mxu1 }
 0x283   :  { %v2460_v31 = vpop.f32.mrb[81].mxu1 }
 0x284   :  { %v1886_v9 = vadd.f32 %v1885_v18, %v1871_v62  ;;  %v1872_v16 = vmax.f32 %v1830_v1, 0.0  ;;  %v2461_v40 = vadd.f32 %v2460_v31, %v2459_v39  ;;  %v2462_v5 = vpop.f32.mrb[82].mxu1  ;;  %v14_v31 = vstv %s3632_s8 }
 0x285   :  { %v2463_v13 = vpop.f32.mrb[83].mxu1  ;;  %15 = vst [vmem:[#allocation2] sm:$0x1] %v14_v31 }
 0x286   :  { %v1887_v36 = vadd.f32 %v1886_v9, %v1872_v16  ;;  %v1738_v4 = vadd.f32 %v2461_v40, %v3539_v43  ;;  %v2464_v6 = vadd.f32 %v2463_v13, %v2462_v5 }
 0x288   :  { %v1835_v26 = vadd.f32 %v3530_v55, %v1738_v4  ;;  %v1741_v58 = vadd.f32 %v2464_v6, %v3542_v45 }
 0x28a   :  { %v1873_v35 = vmax.f32 %v1835_v26, 0.0  ;;  %v1838_v15 = vadd.f32 %v3536_v47, %v1741_v58  ;;  %v2465_v49 = vpop.f32.mrb[84].mxu1 }
 0x28b   :  { %v2466_v8 = vpop.f32.mrb[85].mxu1 }
 0x28c   :  { %v1888_v14 = vadd.f32 %v1887_v36, %v1873_v35  ;;  %v1874_v52 = vmax.f32 %v1838_v15, 0.0  ;;  %v2467_v46 = vadd.f32 %v2466_v8, %v2465_v49  ;;  %v2468_v23 = vpop.f32.mrb[86].mxu1  ;;  %v2756_v36 = vmov 0   ;;  %v2190_v4 = vld [vmem:[#allocation2] ss:$0 sm:$0xff] }
 0x28d   :  { %v2469_v34 = vpop.f32.mrb[87].mxu1  ;;  %2636 = vset.pattern.permute.xlu0 %v2756_v36 }
 0x28e   :  { %v1889_v10 = vadd.f32 %v1888_v14, %v1874_v52  ;;  %v1746_v57 = vadd.f32 %v2467_v46, %v3557_v41  ;;  %v2470_v19 = vadd.f32 %v2469_v34, %v2468_v23 }
 0x290   :  { %v1843_v43 = vadd.f32 %v3528_v25, %v1746_v57  ;;  %v1749_v55 = vadd.f32 %v2470_v19, %v3560_v27 }
 0x292   :  { %v1875_v30 = vmax.f32 %v1843_v43, 0.0  ;;  %v1846_v45 = vadd.f32 %v3534_v29, %v1749_v55  ;;  %v2471_v44 = vpop.f32.mrb[88].mxu1 }
 0x293   :  { %v2472_v47 = vpop.f32.mrb[89].mxu1 }
 0x294   :  { %v1876_v54 = vmax.f32 %v1846_v45, 0.0  ;;  %v2473_v2 = vadd.f32 %v2472_v47, %v2471_v44  ;;  %v2474_v17 = vpop.f32.mrb[90].mxu1  ;;  %v1890_v51 = vadd.f32 %v1889_v10, %v1875_v30 }
 0x295   :  { %v2475_v7 = vpop.f32.mrb[91].mxu1 }
 0x296   :  { %v2476_v42 = vadd.f32 %v2475_v7, %v2474_v17  ;;  %v1754_v48 = vadd.f32 %v2473_v2, %v3567_v24  ;;  %v1891_v28 = vadd.f32 %v1890_v51, %v1876_v54 }
 0x298   :  { %v1851_v41 = vadd.f32 %v3548_v38, %v1754_v48  ;;  %v1757_v25 = vadd.f32 %v2476_v42, %v3570_v32 }
 0x29a   :  { %v1877_v50 = vmax.f32 %v1851_v41, 0.0  ;;  %v1854_v27 = vadd.f32 %v3554_v21, %v1757_v25  ;;  %v2477_v60 = vpop.f32.mrb[92].mxu1 }
 0x29b   :  { %v2478_v29 = vpop.f32.mrb[93].mxu1 }
 0x29c   :  { %v1892_v37 = vadd.f32 %v1891_v28, %v1877_v50  ;;  %v1878_v63 = vmax.f32 %v1854_v27, 0.0  ;;  %v2479_v61 = vadd.f32 %v2478_v29, %v2477_v60  ;;  %v2480_v53 = vpop.f32.mrb[94].mxu1 }
 0x29d   :  { %v2481_v22 = vpop.f32.mrb[95].mxu1 }
 0x29e   :  { %v1893_v18 = vadd.f32 %v1892_v37, %v1878_v63  ;;  %v1762_v59 = vadd.f32 %v2479_v61, %v3577_v3  ;;  %v2482_v33 = vadd.f32 %v2481_v22, %v2480_v53 }
 0x2a0   :  { %v1859_v24 = vadd.f32 %v3546_v56, %v1762_v59  ;;  %v1765_v38 = vadd.f32 %v2482_v33, %v3580_v12  ;;  %v2180_v56 = vld [vmem:[%s3633_s6] ss:$0 sm:$0xff] }
 0x2a2   :  { %v1879_v0 = vmax.f32 %v1859_v24, 0.0  ;;  %v1862_v32 = vadd.f32 %v3552_v11, %v1765_v38  ;;  %v2189_v11 = vld [vmem:[%s3634_s7] ss:$0 sm:$0xff] }
 0x2a4   :  { %v1894_v20 = vadd.f32 %v1893_v18, %v1879_v0  ;;  %v1880_v21 = vmax.f32 %v1862_v32, 0.0 }
 0x2a6   :  { %v1895_v62 = vadd.f32 %v1894_v20, %v1880_v21 }
 0x2a8   :  { %v1896_v1 = vmul.f32 0.0625, %v1895_v62 }
 0x2aa   :  { %v1897_v39 = vpack.c.bf16 %v1896_v1, %v1896_v1 }
 0x2ac   :  { %2629 = vmatmul.mubr.bf16.vlgmr.msra.gmra.mrb[96].mxu1 %v1897_v39 }
 0x37f   :  { %v2003_v3 = vpop.f32.mrb[96].mxu1 }
 0x380   :  { %v2004_v12 = vadd.f32 %v2180_v56, %v2003_v3  ;;  %v2630_v9 = vpop.f32.mrb[97].mxu1 }
 0x381   :  { %v2006_v16 = vpop.f32.mrb[98].mxu1 }
 0x382   :  { %v2009_v40 = vmax.f32 %v2004_v12, 0.0  ;;  %v2631_v5 = vpop.f32.mrb[99].mxu1 }
 0x384   :  { %v2017_v13 = vmul.f32 %v2189_v11, %v2009_v40 }
 0x386   :  { %2018 = vadd.xlane.f32.xlu0 %v2017_v13 }
 0x413   :  { %v2019_v6 = vpop.xlane.xlu0 %2018 }
 0x414   :  { %v2027_v26 = vadd.f32 %v2190_v4, %v2019_v6 }
 0x416   :  { %2030 = vperm.xlu0 %2636, %v2027_v26  }
 0x495   :  { %v2031_v58 = vpop.permute.xlu0 %2030 }
 0x496   :  { %2033 = vst [vmem:[%s3635_s9] sm:$0xff] %v2031_v58 }

</bundles_post_ra>
